<compile_context>
chip_gen: v7x
topology: tpu7x:2x2x1
jax: 0.10.0
libtpu: 0.0.40
codegen_flags: <defaults>
</compile_context>

<pallas_src>
import jax
import jax.numpy as jnp
from jax.experimental import pallas as pl
from jax.experimental.pallas import tpu as pltpu


def _round_up(x: int, m: int) -> int:
    return ((x + m - 1) // m) * m


def make_rnn_kernel(n_layers: int, seq_len: int, proj_chunk_rows: int,
                    use_bf16: bool):
    """Kernel closed over static n_layers / seq_len / chunking / matmul dtype.

    Ref order:
      embs_ref [T, B_tile, E]                         (time-major batch tile)
      per layer l: w_ih_t [in_l, Hp], w_hh_t [Hp, Hp], bias [1, Hp]
                                                      (bias = b_ih + b_hh)
      w_out_t [Hp, TAG_PAD], b_out [1, TAG_PAD]       (weights VMEM-resident)
      out_ref [B_tile, TAG_PAD]
      seq_ref [T, B_tile, Hp]                         (VMEM scratch, per layer)
    """
    mm_dtype = jnp.bfloat16 if use_bf16 else jnp.float32

    def kernel(embs_ref, *refs):
        seq_ref = refs[-1]                    # [T, Bt, Hp] VMEM scratch
        out_ref = refs[-2]                    # [Bt, TAG_PAD]
        wrefs = refs[:-2]

        bt = seq_ref.shape[1]
        hp = seq_ref.shape[2]
        t_chunk = max(1, proj_chunk_rows // bt)   # whole timesteps per chunk

        h_last = jnp.zeros((bt, hp), jnp.float32)
        for layer in range(n_layers):
            w_ih_t = wrefs[3 * layer][...].astype(mm_dtype)      # [in_l, Hp]
            w_hh_t = wrefs[3 * layer + 1][...].astype(mm_dtype)  # [Hp, Hp]
            bias = wrefs[3 * layer + 2][...]                     # [1, Hp] f32

            # Hoisted input projection x @ W_ih^T (+ fused bias) for all
            # timesteps, done in bounded row chunks written straight into
            # seq_ref so no [T*Bt, Hp] temporary stays live (VMEM/vreg bound).
            for t0 in range(0, seq_len, t_chunk):
                tc = min(t_chunk, seq_len - t0)
                if layer == 0:
                    xk = embs_ref[pl.ds(t0, tc)].astype(mm_dtype)  # [tc,Bt,E]
                else:
                    xk = seq_ref[pl.ds(t0, tc)].astype(mm_dtype)   # [tc,Bt,Hp]
                in_dim = xk.shape[-1]
                projk = jnp.dot(xk.reshape(tc * bt, in_dim), w_ih_t,
                                preferred_element_type=jnp.float32) + bias
                seq_ref[pl.ds(t0, tc)] = projk.reshape(tc, bt, hp)

            write_seq = layer < (n_layers - 1)   # last layer only needs h_last

            def step(t, h, w_hh_t=w_hh_t, write_seq=write_seq):
                # Serial part only: h @ W_hh (loop-invariant RHS) + precomputed
                # projection, tanh in f32 (EUP; v5e has no bf16 elementwise).
                pre = seq_ref[t] + jnp.dot(h.astype(mm_dtype), w_hh_t,
                                           preferred_element_type=jnp.float32)
                h_new = jnp.tanh(pre)
                if write_seq:
                    seq_ref[t] = h_new           # becomes next layer's input
                return h_new

            h_last = jax.lax.fori_loop(
                0, seq_len, step, jnp.zeros((bt, hp), jnp.float32),
                unroll=min(seq_len, 8))          # partial unroll, not full

        # Dropout is identity at inference; Linear + sigmoid on last hidden.
        w_out_t = wrefs[3 * n_layers][...].astype(mm_dtype)   # [Hp, TAG_PAD]
        b_out = wrefs[3 * n_layers + 1][...]                  # [1, TAG_PAD]
        logits = jnp.dot(h_last.astype(mm_dtype), w_out_t,
                         preferred_element_type=jnp.float32) + b_out
        out_ref[...] = jax.nn.sigmoid(logits)    # lane-dense (128-wide) store

    return kernel


def sentiment_rnn_forward(sentence, params, *, n_layers, hidden_size,
                          tagset_size, b_tile=None, use_bf16=False,
                          proj_chunk_rows=512):
    """sentence: [B, T] int32 token ids. Returns squeezed sigmoid outputs."""
    B, T = sentence.shape
    E = params["emb"].shape[1]
    H = hidden_size
    Hp = _round_up(max(H, 1), 128)                  # lane-dense hidden width
    tag_pad = _round_up(max(tagset_size, 1), 128)   # lane-dense output width
    mm_dtype = jnp.bfloat16 if use_bf16 else jnp.float32
    x_itemsize = 2 if use_bf16 else 4

    # ---- batch tile selection (MXU rows / megacore split / VMEM budget) ----
    b_pad0 = _round_up(B, 8)
    if b_tile is None:
        b_tile = min(128, b_pad0)                   # fill MXU rows (256 also
        if b_pad0 > 8 and b_pad0 // b_tile < 2:     #  viable on v6e if VMEM ok)
            # >= 2 grid steps so both v7x TensorCores get work.
            b_tile = min(128, _round_up((b_pad0 + 1) // 2, 8))
        # Cap so seq scratch + double-buffered embedding tile fits a ~24 MiB
        # budget (safe on v7x's 64 MiB physical VMEM).
        budget = 24 * 1024 * 1024
        while b_tile > 8 and (T * b_tile * Hp * 4
                              + 2 * T * b_tile * E * x_itemsize) > budget:
            b_tile = max(8, _round_up(b_tile // 2, 8))
    b_tile = max(8, _round_up(b_tile, 8))           # keep reshapes relayout-free
    b_pad = _round_up(B, b_tile)

    # ---- glue outside the kernel (embedding gather + layout plumbing) ------
    embs = jnp.take(params["emb"], sentence, axis=0).astype(mm_dtype)  # [B,T,E]
    if b_pad != B:
        embs = jnp.pad(embs, ((0, b_pad - B), (0, 0), (0, 0)))
    embs_tm = jnp.transpose(embs, (1, 0, 2))        # time-major [T, B_pad, E]

    kernel_inputs = [embs_tm]
    in_specs = [pl.BlockSpec((T, b_tile, E), lambda b: (0, b, 0))]
    # Loop-invariant weights: whole-array VMEM residency (single buffer, no
    # per-grid-step double-buffering / DMA bookkeeping).
    weight_spec = pl.BlockSpec(memory_space=pltpu.MemorySpace.VMEM)
    weight_bytes = 0
    for l in range(n_layers):
        in_dim = E if l == 0 else Hp
        w_ih = params[f"w_ih_{l}"].astype(jnp.float32)   # [H, in_orig]
        w_hh = params[f"w_hh_{l}"].astype(jnp.float32)   # [H, H]
        # Pre-transpose + zero-pad hidden to Hp lanes. Padded lanes provably
        # stay 0 through the recurrence (zero W columns + zero bias, tanh(0)=0).
        w_ih_t = jnp.zeros((in_dim, Hp), mm_dtype).at[:w_ih.shape[1], :H].set(
            w_ih.T.astype(mm_dtype))
        w_hh_t = jnp.zeros((Hp, Hp), mm_dtype).at[:H, :H].set(
            w_hh.T.astype(mm_dtype))
        bias = jnp.zeros((1, Hp), jnp.float32).at[:, :H].set(
            (params[f"b_ih_{l}"] + params[f"b_hh_{l}"]
             ).reshape(1, H).astype(jnp.float32))        # fused b_ih + b_hh
        kernel_inputs += [w_ih_t, w_hh_t, bias]
        in_specs += [weight_spec, weight_spec, weight_spec]
        weight_bytes += (w_ih_t.size + w_hh_t.size) * x_itemsize + bias.size * 4
    # Classifier padded to Hp rows / 128 output lanes (sliced back below).
    w_out_t = jnp.zeros((Hp, tag_pad), mm_dtype).at[:H, :tagset_size].set(
        params["w_out"].T.astype(mm_dtype))
    b_out_p = jnp.zeros((1, tag_pad), jnp.float32).at[:, :tagset_size].set(
        params["b_out"].reshape(1, -1).astype(jnp.float32))
    kernel_inputs += [w_out_t, b_out_p]
    in_specs += [weight_spec, weight_spec]
    weight_bytes += w_out_t.size * x_itemsize + b_out_p.size * 4

    # ---- VMEM budget, re-derived instead of a fixed constant ---------------
    vmem_est = (T * b_tile * Hp * 4                  # seq_ref scratch
                + 2 * T * b_tile * E * x_itemsize    # double-buffered embs tile
                + 2 * b_tile * tag_pad * 4           # double-buffered output
                + weight_bytes)
    vmem_limit = int(min(100 * 1024 * 1024,
                         max(32 * 1024 * 1024, int(vmem_est * 1.5))))

    grid = (b_pad // b_tile,)
    out = pl.pallas_call(
        make_rnn_kernel(n_layers, T, proj_chunk_rows, use_bf16),
        out_shape=jax.ShapeDtypeStruct((b_pad, tag_pad), jnp.float32),
        grid_spec=pltpu.PrefetchScalarGridSpec(
            num_scalar_prefetch=0,
            grid=grid,
            in_specs=in_specs,
            out_specs=pl.BlockSpec((b_tile, tag_pad), lambda b: (b, 0)),
            scratch_shapes=[pltpu.VMEM((T, b_tile, Hp), jnp.float32)],
        ),
        compiler_params=pltpu.CompilerParams(
            dimension_semantics=("parallel",),       # megacore batch split
            vmem_limit_bytes=vmem_limit,
        ),
    )(*kernel_inputs)

    # TODO(synk): for very long sequences add a second ("arbitrary") grid axis
    # over time chunks carrying h in VMEM scratch, to bound seq_ref on v7x.
    out = out[:B, :tagset_size]
    return jnp.squeeze(out)   # matches sig_out.squeeze()


def init_params(key, vocab_size, embedding_dim, hidden_size, tagset_size,
                n_layers):
    """Deterministic init mirroring PyTorch shapes (uniform +-1/sqrt(H))."""
    params = {}
    k = 1.0 / jnp.sqrt(jnp.float32(hidden_size))
    keys = jax.random.split(key, 2 + 4 * n_layers + 2)
    params["emb"] = jax.random.normal(keys[0], (vocab_size, embedding_dim),
                                      jnp.float32)
    ki = 1
    for l in range(n_layers):
        in_dim = embedding_dim if l == 0 else hidden_size
        params[f"w_ih_{l}"] = jax.random.uniform(
            keys[ki], (hidden_size, in_dim), jnp.float32, -k, k); ki += 1
        params[f"w_hh_{l}"] = jax.random.uniform(
            keys[ki], (hidden_size, hidden_size), jnp.float32, -k, k); ki += 1
        params[f"b_ih_{l}"] = jax.random.uniform(
            keys[ki], (hidden_size,), jnp.float32, -k, k); ki += 1
        params[f"b_hh_{l}"] = jax.random.uniform(
            keys[ki], (hidden_size,), jnp.float32, -k, k); ki += 1
    params["w_out"] = jax.random.uniform(
        keys[ki], (tagset_size, hidden_size), jnp.float32, -k, k); ki += 1
    params["b_out"] = jax.random.uniform(
        keys[ki], (tagset_size,), jnp.float32, -k, k)
    return params


def reference_forward(sentence, params, *, n_layers):
    """Pure-JAX reference (full-precision matmuls) for correctness checking."""
    hi = jax.lax.Precision.HIGHEST
    x = jnp.take(params["emb"], sentence, axis=0).astype(jnp.float32)
    B, T, _ = x.shape
    for l in range(n_layers):
        w_ih = params[f"w_ih_{l}"]; w_hh = params[f"w_hh_{l}"]
        b_ih = params[f"b_ih_{l}"]; b_hh = params[f"b_hh_{l}"]
        h = jnp.zeros((B, w_hh.shape[0]), jnp.float32)
        outs = []
        for t in range(T):
            pre = (jnp.dot(x[:, t, :], w_ih.T, precision=hi) + b_ih
                   + jnp.dot(h, w_hh.T, precision=hi) + b_hh)
            h = jnp.tanh(pre)
            outs.append(h)
        x = jnp.stack(outs, axis=1)
    logits = jnp.dot(x[:, -1, :], params["w_out"].T, precision=hi) + params["b_out"]
    return jnp.squeeze(jax.nn.sigmoid(logits))


if __name__ == "__main__":
    # Small shapes consistent with the module's forward.
    VOCAB, EMB, HID, TAGS, LAYERS = 100, 32, 32, 2, 2
    B, T = 2, 8

    key = jax.random.PRNGKey(0)
    pkey, skey = jax.random.split(key)
    params = init_params(pkey, VOCAB, EMB, HID, TAGS, LAYERS)
    sentence = jax.random.randint(skey, (B, T), 0, VOCAB, dtype=jnp.int32)

    ref = jax.block_until_ready(
        reference_forward(sentence, params, n_layers=LAYERS))

    # f32 MXU-operand path (default).
    out = jax.block_until_ready(
        sentiment_rnn_forward(sentence, params, n_layers=LAYERS,
                              hidden_size=HID, tagset_size=TAGS))
    assert out.shape == ref.shape
    # Tolerance covers MXU multi-pass f32 vs XLA matmul-precision differences,
    # while remaining far below any bug-level (>1e-2) error.
    assert jnp.allclose(out, ref, atol=5e-3, rtol=5e-3), \
        float(jnp.max(jnp.abs(out - ref)))

    # bf16 MXU-operand fast path (f32 accumulation), looser tolerance.
    out_bf16 = jax.block_until_ready(
        sentiment_rnn_forward(sentence, params, n_layers=LAYERS,
                              hidden_size=HID, tagset_size=TAGS,
                              use_bf16=True))
    assert out_bf16.shape == ref.shape
    assert jnp.allclose(out_bf16, ref, atol=3e-2, rtol=3e-2), \
        float(jnp.max(jnp.abs(out_bf16 - ref)))

    print("KERNEL_OK")
</pallas_src>

<mosaic_0001>
module attributes {stable_mosaic.version = 11 : i64} {
  func.func @kernel(%arg0: i32, %arg1: memref<8x8x32xf32, #tpu.memory_space<vmem>>, %arg2: memref<32x128xf32, #tpu.memory_space<vmem>>, %arg3: memref<128x128xf32, #tpu.memory_space<vmem>>, %arg4: memref<1x128xf32, #tpu.memory_space<vmem>>, %arg5: memref<128x128xf32, #tpu.memory_space<vmem>>, %arg6: memref<128x128xf32, #tpu.memory_space<vmem>>, %arg7: memref<1x128xf32, #tpu.memory_space<vmem>>, %arg8: memref<128x128xf32, #tpu.memory_space<vmem>>, %arg9: memref<1x128xf32, #tpu.memory_space<vmem>>, %arg10: memref<8x128xf32, #tpu.memory_space<vmem>>, %arg11: memref<8x8x128xf32, #tpu.memory_space<vmem>>) attributes {dimension_semantics = [#tpu.dimension_semantics<parallel>], iteration_bounds = array<i64: 1>, scalar_prefetch = 0 : i64, scratch_operands = 1 : i64, tpu.core_type = #tpu.core_type<tc>, window_params = [{transform_indices = @transform_0, window_bounds = array<i64: 8, 8, 32>}, {pipeline_mode = #tpu.pipeline_mode<synchronous>, transform_indices = @transform_1, window_bounds = array<i64: 32, 128>}, {pipeline_mode = #tpu.pipeline_mode<synchronous>, transform_indices = @transform_2, window_bounds = array<i64: 128, 128>}, {pipeline_mode = #tpu.pipeline_mode<synchronous>, transform_indices = @transform_3, window_bounds = array<i64: 1, 128>}, {pipeline_mode = #tpu.pipeline_mode<synchronous>, transform_indices = @transform_4, window_bounds = array<i64: 128, 128>}, {pipeline_mode = #tpu.pipeline_mode<synchronous>, transform_indices = @transform_5, window_bounds = array<i64: 128, 128>}, {pipeline_mode = #tpu.pipeline_mode<synchronous>, transform_indices = @transform_6, window_bounds = array<i64: 1, 128>}, {pipeline_mode = #tpu.pipeline_mode<synchronous>, transform_indices = @transform_7, window_bounds = array<i64: 128, 128>}, {pipeline_mode = #tpu.pipeline_mode<synchronous>, transform_indices = @transform_8, window_bounds = array<i64: 1, 128>}, {transform_indices = @transform_9, window_bounds = array<i64: 8, 128>}]} {
    %c0 = arith.constant 0 : index
    %c0_0 = arith.constant 0 : index
    %0 = vector.load %arg2[%c0, %c0_0] : memref<32x128xf32, #tpu.memory_space<vmem>>, vector<32x128xf32>
    %c0_1 = arith.constant 0 : index
    %c0_2 = arith.constant 0 : index
    %1 = vector.load %arg3[%c0_1, %c0_2] : memref<128x128xf32, #tpu.memory_space<vmem>>, vector<128x128xf32>
    %c0_3 = arith.constant 0 : index
    %c0_4 = arith.constant 0 : index
    %2 = vector.load %arg4[%c0_3, %c0_4] : memref<1x128xf32, #tpu.memory_space<vmem>>, vector<1x128xf32>
    %c0_5 = arith.constant 0 : index
    %c0_6 = arith.constant 0 : index
    %c0_7 = arith.constant 0 : index
    %3 = vector.load %arg1[%c0_5, %c0_6, %c0_7] : memref<8x8x32xf32, #tpu.memory_space<vmem>>, vector<8x8x32xf32>
    %4 = vector.shape_cast %3 : vector<8x8x32xf32> to vector<64x32xf32>
    %cst = arith.constant dense<0.000000e+00> : vector<64x128xf32>
    %5 = tpu.matmul %4, %0, %cst {dimension_numbers = #tpu.dot_dimension_numbers<[1], [0], [0], [1], [0, 0, 1, 1], [], []>} : vector<64x32xf32>, vector<32x128xf32>, vector<64x128xf32> -> vector<64x128xf32>
    %6 = vector.broadcast %2 : vector<1x128xf32> to vector<64x128xf32>
    %7 = arith.addf %5, %6 : vector<64x128xf32>
    %8 = vector.shape_cast %7 : vector<64x128xf32> to vector<8x8x128xf32>
    %c0_8 = arith.constant 0 : index
    %c0_9 = arith.constant 0 : index
    %c0_10 = arith.constant 0 : index
    %9 = vector.load %arg11[%c0_8, %c0_9, %c0_10] : memref<8x8x128xf32, #tpu.memory_space<vmem>>, vector<8x8x128xf32>
    tpu.vector_store %arg11[%c0_8, %c0_9, %c0_10], %8 {strides = array<i32>} : memref<8x8x128xf32, #tpu.memory_space<vmem>>, vector<8x8x128xf32>,
    %cst_11 = arith.constant 0.000000e+00 : f32
    %10 = vector.broadcast %cst_11 : f32 to vector<8x128xf32>
    %c0_i32 = arith.constant 0 : i32
    %11 = arith.index_cast %c0_i32 : i32 to index
    %c0_12 = arith.constant 0 : index
    %c0_13 = arith.constant 0 : index
    %12 = vector.load %arg11[%11, %c0_12, %c0_13] : memref<8x8x128xf32, #tpu.memory_space<vmem>>, vector<1x8x128xf32>
    %13 = vector.shape_cast %12 : vector<1x8x128xf32> to vector<8x128xf32>
    %cst_14 = arith.constant dense<0.000000e+00> : vector<8x128xf32>
    %14 = tpu.matmul %10, %1, %cst_14 {dimension_numbers = #tpu.dot_dimension_numbers<[1], [0], [0], [1], [0, 0, 1, 1], [], []>} : vector<8x128xf32>, vector<128x128xf32>, vector<8x128xf32> -> vector<8x128xf32>
    %15 = arith.addf %13, %14 : vector<8x128xf32>
    %16 = math.tanh %15 : vector<8x128xf32>
    %17 = arith.index_cast %c0_i32 : i32 to index
    %c0_15 = arith.constant 0 : index
    %c0_16 = arith.constant 0 : index
    %18 = vector.load %arg11[%17, %c0_15, %c0_16] : memref<8x8x128xf32, #tpu.memory_space<vmem>>, vector<1x8x128xf32>
    %19 = vector.shape_cast %18 : vector<1x8x128xf32> to vector<8x128xf32>
    %20 = vector.shape_cast %16 : vector<8x128xf32> to vector<1x8x128xf32>
    tpu.vector_store %arg11[%17, %c0_15, %c0_16], %20 {strides = array<i32>} : memref<8x8x128xf32, #tpu.memory_space<vmem>>, vector<1x8x128xf32>,
    %c1_i32 = arith.constant 1 : i32
    %21 = arith.index_cast %c1_i32 : i32 to index
    %c0_17 = arith.constant 0 : index
    %c0_18 = arith.constant 0 : index
    %22 = vector.load %arg11[%21, %c0_17, %c0_18] : memref<8x8x128xf32, #tpu.memory_space<vmem>>, vector<1x8x128xf32>
    %23 = vector.shape_cast %22 : vector<1x8x128xf32> to vector<8x128xf32>
    %cst_19 = arith.constant dense<0.000000e+00> : vector<8x128xf32>
    %24 = tpu.matmul %16, %1, %cst_19 {dimension_numbers = #tpu.dot_dimension_numbers<[1], [0], [0], [1], [0, 0, 1, 1], [], []>} : vector<8x128xf32>, vector<128x128xf32>, vector<8x128xf32> -> vector<8x128xf32>
    %25 = arith.addf %23, %24 : vector<8x128xf32>
    %26 = math.tanh %25 : vector<8x128xf32>
    %27 = arith.index_cast %c1_i32 : i32 to index
    %c0_20 = arith.constant 0 : index
    %c0_21 = arith.constant 0 : index
    %28 = vector.load %arg11[%27, %c0_20, %c0_21] : memref<8x8x128xf32, #tpu.memory_space<vmem>>, vector<1x8x128xf32>
    %29 = vector.shape_cast %28 : vector<1x8x128xf32> to vector<8x128xf32>
    %30 = vector.shape_cast %26 : vector<8x128xf32> to vector<1x8x128xf32>
    tpu.vector_store %arg11[%27, %c0_20, %c0_21], %30 {strides = array<i32>} : memref<8x8x128xf32, #tpu.memory_space<vmem>>, vector<1x8x128xf32>,
    %c2_i32 = arith.constant 2 : i32
    %31 = arith.index_cast %c2_i32 : i32 to index
    %c0_22 = arith.constant 0 : index
    %c0_23 = arith.constant 0 : index
    %32 = vector.load %arg11[%31, %c0_22, %c0_23] : memref<8x8x128xf32, #tpu.memory_space<vmem>>, vector<1x8x128xf32>
    %33 = vector.shape_cast %32 : vector<1x8x128xf32> to vector<8x128xf32>
    %cst_24 = arith.constant dense<0.000000e+00> : vector<8x128xf32>
    %34 = tpu.matmul %26, %1, %cst_24 {dimension_numbers = #tpu.dot_dimension_numbers<[1], [0], [0], [1], [0, 0, 1, 1], [], []>} : vector<8x128xf32>, vector<128x128xf32>, vector<8x128xf32> -> vector<8x128xf32>
    %35 = arith.addf %33, %34 : vector<8x128xf32>
    %36 = math.tanh %35 : vector<8x128xf32>
    %37 = arith.index_cast %c2_i32 : i32 to index
    %c0_25 = arith.constant 0 : index
    %c0_26 = arith.constant 0 : index
    %38 = vector.load %arg11[%37, %c0_25, %c0_26] : memref<8x8x128xf32, #tpu.memory_space<vmem>>, vector<1x8x128xf32>
    %39 = vector.shape_cast %38 : vector<1x8x128xf32> to vector<8x128xf32>
    %40 = vector.shape_cast %36 : vector<8x128xf32> to vector<1x8x128xf32>
    tpu.vector_store %arg11[%37, %c0_25, %c0_26], %40 {strides = array<i32>} : memref<8x8x128xf32, #tpu.memory_space<vmem>>, vector<1x8x128xf32>,
    %c3_i32 = arith.constant 3 : i32
    %41 = arith.index_cast %c3_i32 : i32 to index
    %c0_27 = arith.constant 0 : index
    %c0_28 = arith.constant 0 : index
    %42 = vector.load %arg11[%41, %c0_27, %c0_28] : memref<8x8x128xf32, #tpu.memory_space<vmem>>, vector<1x8x128xf32>
    %43 = vector.shape_cast %42 : vector<1x8x128xf32> to vector<8x128xf32>
    %cst_29 = arith.constant dense<0.000000e+00> : vector<8x128xf32>
    %44 = tpu.matmul %36, %1, %cst_29 {dimension_numbers = #tpu.dot_dimension_numbers<[1], [0], [0], [1], [0, 0, 1, 1], [], []>} : vector<8x128xf32>, vector<128x128xf32>, vector<8x128xf32> -> vector<8x128xf32>
    %45 = arith.addf %43, %44 : vector<8x128xf32>
    %46 = math.tanh %45 : vector<8x128xf32>
    %47 = arith.index_cast %c3_i32 : i32 to index
    %c0_30 = arith.constant 0 : index
    %c0_31 = arith.constant 0 : index
    %48 = vector.load %arg11[%47, %c0_30, %c0_31] : memref<8x8x128xf32, #tpu.memory_space<vmem>>, vector<1x8x128xf32>
    %49 = vector.shape_cast %48 : vector<1x8x128xf32> to vector<8x128xf32>
    %50 = vector.shape_cast %46 : vector<8x128xf32> to vector<1x8x128xf32>
    tpu.vector_store %arg11[%47, %c0_30, %c0_31], %50 {strides = array<i32>} : memref<8x8x128xf32, #tpu.memory_space<vmem>>, vector<1x8x128xf32>,
    %c4_i32 = arith.constant 4 : i32
    %51 = arith.index_cast %c4_i32 : i32 to index
    %c0_32 = arith.constant 0 : index
    %c0_33 = arith.constant 0 : index
    %52 = vector.load %arg11[%51, %c0_32, %c0_33] : memref<8x8x128xf32, #tpu.memory_space<vmem>>, vector<1x8x128xf32>
    %53 = vector.shape_cast %52 : vector<1x8x128xf32> to vector<8x128xf32>
    %cst_34 = arith.constant dense<0.000000e+00> : vector<8x128xf32>
    %54 = tpu.matmul %46, %1, %cst_34 {dimension_numbers = #tpu.dot_dimension_numbers<[1], [0], [0], [1], [0, 0, 1, 1], [], []>} : vector<8x128xf32>, vector<128x128xf32>, vector<8x128xf32> -> vector<8x128xf32>
    %55 = arith.addf %53, %54 : vector<8x128xf32>
    %56 = math.tanh %55 : vector<8x128xf32>
    %57 = arith.index_cast %c4_i32 : i32 to index
    %c0_35 = arith.constant 0 : index
    %c0_36 = arith.constant 0 : index
    %58 = vector.load %arg11[%57, %c0_35, %c0_36] : memref<8x8x128xf32, #tpu.memory_space<vmem>>, vector<1x8x128xf32>
    %59 = vector.shape_cast %58 : vector<1x8x128xf32> to vector<8x128xf32>
    %60 = vector.shape_cast %56 : vector<8x128xf32> to vector<1x8x128xf32>
    tpu.vector_store %arg11[%57, %c0_35, %c0_36], %60 {strides = array<i32>} : memref<8x8x128xf32, #tpu.memory_space<vmem>>, vector<1x8x128xf32>,
    %c5_i32 = arith.constant 5 : i32
    %61 = arith.index_cast %c5_i32 : i32 to index
    %c0_37 = arith.constant 0 : index
    %c0_38 = arith.constant 0 : index
    %62 = vector.load %arg11[%61, %c0_37, %c0_38] : memref<8x8x128xf32, #tpu.memory_space<vmem>>, vector<1x8x128xf32>
    %63 = vector.shape_cast %62 : vector<1x8x128xf32> to vector<8x128xf32>
    %cst_39 = arith.constant dense<0.000000e+00> : vector<8x128xf32>
    %64 = tpu.matmul %56, %1, %cst_39 {dimension_numbers = #tpu.dot_dimension_numbers<[1], [0], [0], [1], [0, 0, 1, 1], [], []>} : vector<8x128xf32>, vector<128x128xf32>, vector<8x128xf32> -> vector<8x128xf32>
    %65 = arith.addf %63, %64 : vector<8x128xf32>
    %66 = math.tanh %65 : vector<8x128xf32>
    %67 = arith.index_cast %c5_i32 : i32 to index
    %c0_40 = arith.constant 0 : index
    %c0_41 = arith.constant 0 : index
    %68 = vector.load %arg11[%67, %c0_40, %c0_41] : memref<8x8x128xf32, #tpu.memory_space<vmem>>, vector<1x8x128xf32>
    %69 = vector.shape_cast %68 : vector<1x8x128xf32> to vector<8x128xf32>
    %70 = vector.shape_cast %66 : vector<8x128xf32> to vector<1x8x128xf32>
    tpu.vector_store %arg11[%67, %c0_40, %c0_41], %70 {strides = array<i32>} : memref<8x8x128xf32, #tpu.memory_space<vmem>>, vector<1x8x128xf32>,
    %c6_i32 = arith.constant 6 : i32
    %71 = arith.index_cast %c6_i32 : i32 to index
    %c0_42 = arith.constant 0 : index
    %c0_43 = arith.constant 0 : index
    %72 = vector.load %arg11[%71, %c0_42, %c0_43] : memref<8x8x128xf32, #tpu.memory_space<vmem>>, vector<1x8x128xf32>
    %73 = vector.shape_cast %72 : vector<1x8x128xf32> to vector<8x128xf32>
    %cst_44 = arith.constant dense<0.000000e+00> : vector<8x128xf32>
    %74 = tpu.matmul %66, %1, %cst_44 {dimension_numbers = #tpu.dot_dimension_numbers<[1], [0], [0], [1], [0, 0, 1, 1], [], []>} : vector<8x128xf32>, vector<128x128xf32>, vector<8x128xf32> -> vector<8x128xf32>
    %75 = arith.addf %73, %74 : vector<8x128xf32>
    %76 = math.tanh %75 : vector<8x128xf32>
    %77 = arith.index_cast %c6_i32 : i32 to index
    %c0_45 = arith.constant 0 : index
    %c0_46 = arith.constant 0 : index
    %78 = vector.load %arg11[%77, %c0_45, %c0_46] : memref<8x8x128xf32, #tpu.memory_space<vmem>>, vector<1x8x128xf32>
    %79 = vector.shape_cast %78 : vector<1x8x128xf32> to vector<8x128xf32>
    %80 = vector.shape_cast %76 : vector<8x128xf32> to vector<1x8x128xf32>
    tpu.vector_store %arg11[%77, %c0_45, %c0_46], %80 {strides = array<i32>} : memref<8x8x128xf32, #tpu.memory_space<vmem>>, vector<1x8x128xf32>,
    %c7_i32 = arith.constant 7 : i32
    %81 = arith.index_cast %c7_i32 : i32 to index
    %c0_47 = arith.constant 0 : index
    %c0_48 = arith.constant 0 : index
    %82 = vector.load %arg11[%81, %c0_47, %c0_48] : memref<8x8x128xf32, #tpu.memory_space<vmem>>, vector<1x8x128xf32>
    %83 = vector.shape_cast %82 : vector<1x8x128xf32> to vector<8x128xf32>
    %cst_49 = arith.constant dense<0.000000e+00> : vector<8x128xf32>
    %84 = tpu.matmul %76, %1, %cst_49 {dimension_numbers = #tpu.dot_dimension_numbers<[1], [0], [0], [1], [0, 0, 1, 1], [], []>} : vector<8x128xf32>, vector<128x128xf32>, vector<8x128xf32> -> vector<8x128xf32>
    %85 = arith.addf %83, %84 : vector<8x128xf32>
    %86 = math.tanh %85 : vector<8x128xf32>
    %87 = arith.index_cast %c7_i32 : i32 to index
    %c0_50 = arith.constant 0 : index
    %c0_51 = arith.constant 0 : index
    %88 = vector.load %arg11[%87, %c0_50, %c0_51] : memref<8x8x128xf32, #tpu.memory_space<vmem>>, vector<1x8x128xf32>
    %89 = vector.shape_cast %88 : vector<1x8x128xf32> to vector<8x128xf32>
    %90 = vector.shape_cast %86 : vector<8x128xf32> to vector<1x8x128xf32>
    tpu.vector_store %arg11[%87, %c0_50, %c0_51], %90 {strides = array<i32>} : memref<8x8x128xf32, #tpu.memory_space<vmem>>, vector<1x8x128xf32>,
    %c8_i32 = arith.constant 8 : i32
    %c0_52 = arith.constant 0 : index
    %c0_53 = arith.constant 0 : index
    %91 = vector.load %arg5[%c0_52, %c0_53] : memref<128x128xf32, #tpu.memory_space<vmem>>, vector<128x128xf32>
    %c0_54 = arith.constant 0 : index
    %c0_55 = arith.constant 0 : index
    %92 = vector.load %arg6[%c0_54, %c0_55] : memref<128x128xf32, #tpu.memory_space<vmem>>, vector<128x128xf32>
    %c0_56 = arith.constant 0 : index
    %c0_57 = arith.constant 0 : index
    %93 = vector.load %arg7[%c0_56, %c0_57] : memref<1x128xf32, #tpu.memory_space<vmem>>, vector<1x128xf32>
    %c0_58 = arith.constant 0 : index
    %c0_59 = arith.constant 0 : index
    %c0_60 = arith.constant 0 : index
    %94 = vector.load %arg11[%c0_58, %c0_59, %c0_60] : memref<8x8x128xf32, #tpu.memory_space<vmem>>, vector<8x8x128xf32>
    %95 = vector.shape_cast %94 : vector<8x8x128xf32> to vector<64x128xf32>
    %cst_61 = arith.constant dense<0.000000e+00> : vector<64x128xf32>
    %96 = tpu.matmul %95, %91, %cst_61 {dimension_numbers = #tpu.dot_dimension_numbers<[1], [0], [0], [1], [0, 0, 1, 1], [], []>} : vector<64x128xf32>, vector<128x128xf32>, vector<64x128xf32> -> vector<64x128xf32>
    %97 = vector.broadcast %93 : vector<1x128xf32> to vector<64x128xf32>
    %98 = arith.addf %96, %97 : vector<64x128xf32>
    %99 = vector.shape_cast %98 : vector<64x128xf32> to vector<8x8x128xf32>
    %c0_62 = arith.constant 0 : index
    %c0_63 = arith.constant 0 : index
    %c0_64 = arith.constant 0 : index
    %100 = vector.load %arg11[%c0_62, %c0_63, %c0_64] : memref<8x8x128xf32, #tpu.memory_space<vmem>>, vector<8x8x128xf32>
    tpu.vector_store %arg11[%c0_62, %c0_63, %c0_64], %99 {strides = array<i32>} : memref<8x8x128xf32, #tpu.memory_space<vmem>>, vector<8x8x128xf32>,
    %cst_65 = arith.constant 0.000000e+00 : f32
    %101 = vector.broadcast %cst_65 : f32 to vector<8x128xf32>
    %c0_i32_66 = arith.constant 0 : i32
    %102 = arith.index_cast %c0_i32_66 : i32 to index
    %c0_67 = arith.constant 0 : index
    %c0_68 = arith.constant 0 : index
    %103 = vector.load %arg11[%102, %c0_67, %c0_68] : memref<8x8x128xf32, #tpu.memory_space<vmem>>, vector<1x8x128xf32>
    %104 = vector.shape_cast %103 : vector<1x8x128xf32> to vector<8x128xf32>
    %cst_69 = arith.constant dense<0.000000e+00> : vector<8x128xf32>
    %105 = tpu.matmul %101, %92, %cst_69 {dimension_numbers = #tpu.dot_dimension_numbers<[1], [0], [0], [1], [0, 0, 1, 1], [], []>} : vector<8x128xf32>, vector<128x128xf32>, vector<8x128xf32> -> vector<8x128xf32>
    %106 = arith.addf %104, %105 : vector<8x128xf32>
    %107 = math.tanh %106 : vector<8x128xf32>
    %c1_i32_70 = arith.constant 1 : i32
    %108 = arith.index_cast %c1_i32_70 : i32 to index
    %c0_71 = arith.constant 0 : index
    %c0_72 = arith.constant 0 : index
    %109 = vector.load %arg11[%108, %c0_71, %c0_72] : memref<8x8x128xf32, #tpu.memory_space<vmem>>, vector<1x8x128xf32>
    %110 = vector.shape_cast %109 : vector<1x8x128xf32> to vector<8x128xf32>
    %cst_73 = arith.constant dense<0.000000e+00> : vector<8x128xf32>
    %111 = tpu.matmul %107, %92, %cst_73 {dimension_numbers = #tpu.dot_dimension_numbers<[1], [0], [0], [1], [0, 0, 1, 1], [], []>} : vector<8x128xf32>, vector<128x128xf32>, vector<8x128xf32> -> vector<8x128xf32>
    %112 = arith.addf %110, %111 : vector<8x128xf32>
    %113 = math.tanh %112 : vector<8x128xf32>
    %c2_i32_74 = arith.constant 2 : i32
    %114 = arith.index_cast %c2_i32_74 : i32 to index
    %c0_75 = arith.constant 0 : index
    %c0_76 = arith.constant 0 : index
    %115 = vector.load %arg11[%114, %c0_75, %c0_76] : memref<8x8x128xf32, #tpu.memory_space<vmem>>, vector<1x8x128xf32>
    %116 = vector.shape_cast %115 : vector<1x8x128xf32> to vector<8x128xf32>
    %cst_77 = arith.constant dense<0.000000e+00> : vector<8x128xf32>
    %117 = tpu.matmul %113, %92, %cst_77 {dimension_numbers = #tpu.dot_dimension_numbers<[1], [0], [0], [1], [0, 0, 1, 1], [], []>} : vector<8x128xf32>, vector<128x128xf32>, vector<8x128xf32> -> vector<8x128xf32>
    %118 = arith.addf %116, %117 : vector<8x128xf32>
    %119 = math.tanh %118 : vector<8x128xf32>
    %c3_i32_78 = arith.constant 3 : i32
    %120 = arith.index_cast %c3_i32_78 : i32 to index
    %c0_79 = arith.constant 0 : index
    %c0_80 = arith.constant 0 : index
    %121 = vector.load %arg11[%120, %c0_79, %c0_80] : memref<8x8x128xf32, #tpu.memory_space<vmem>>, vector<1x8x128xf32>
    %122 = vector.shape_cast %121 : vector<1x8x128xf32> to vector<8x128xf32>
    %cst_81 = arith.constant dense<0.000000e+00> : vector<8x128xf32>
    %123 = tpu.matmul %119, %92, %cst_81 {dimension_numbers = #tpu.dot_dimension_numbers<[1], [0], [0], [1], [0, 0, 1, 1], [], []>} : vector<8x128xf32>, vector<128x128xf32>, vector<8x128xf32> -> vector<8x128xf32>
    %124 = arith.addf %122, %123 : vector<8x128xf32>
    %125 = math.tanh %124 : vector<8x128xf32>
    %c4_i32_82 = arith.constant 4 : i32
    %126 = arith.index_cast %c4_i32_82 : i32 to index
    %c0_83 = arith.constant 0 : index
    %c0_84 = arith.constant 0 : index
    %127 = vector.load %arg11[%126, %c0_83, %c0_84] : memref<8x8x128xf32, #tpu.memory_space<vmem>>, vector<1x8x128xf32>
    %128 = vector.shape_cast %127 : vector<1x8x128xf32> to vector<8x128xf32>
    %cst_85 = arith.constant dense<0.000000e+00> : vector<8x128xf32>
    %129 = tpu.matmul %125, %92, %cst_85 {dimension_numbers = #tpu.dot_dimension_numbers<[1], [0], [0], [1], [0, 0, 1, 1], [], []>} : vector<8x128xf32>, vector<128x128xf32>, vector<8x128xf32> -> vector<8x128xf32>
    %130 = arith.addf %128, %129 : vector<8x128xf32>
    %131 = math.tanh %130 : vector<8x128xf32>
    %c5_i32_86 = arith.constant 5 : i32
    %132 = arith.index_cast %c5_i32_86 : i32 to index
    %c0_87 = arith.constant 0 : index
    %c0_88 = arith.constant 0 : index
    %133 = vector.load %arg11[%132, %c0_87, %c0_88] : memref<8x8x128xf32, #tpu.memory_space<vmem>>, vector<1x8x128xf32>
    %134 = vector.shape_cast %133 : vector<1x8x128xf32> to vector<8x128xf32>
    %cst_89 = arith.constant dense<0.000000e+00> : vector<8x128xf32>
    %135 = tpu.matmul %131, %92, %cst_89 {dimension_numbers = #tpu.dot_dimension_numbers<[1], [0], [0], [1], [0, 0, 1, 1], [], []>} : vector<8x128xf32>, vector<128x128xf32>, vector<8x128xf32> -> vector<8x128xf32>
    %136 = arith.addf %134, %135 : vector<8x128xf32>
    %137 = math.tanh %136 : vector<8x128xf32>
    %c6_i32_90 = arith.constant 6 : i32
    %138 = arith.index_cast %c6_i32_90 : i32 to index
    %c0_91 = arith.constant 0 : index
    %c0_92 = arith.constant 0 : index
    %139 = vector.load %arg11[%138, %c0_91, %c0_92] : memref<8x8x128xf32, #tpu.memory_space<vmem>>, vector<1x8x128xf32>
    %140 = vector.shape_cast %139 : vector<1x8x128xf32> to vector<8x128xf32>
    %cst_93 = arith.constant dense<0.000000e+00> : vector<8x128xf32>
    %141 = tpu.matmul %137, %92, %cst_93 {dimension_numbers = #tpu.dot_dimension_numbers<[1], [0], [0], [1], [0, 0, 1, 1], [], []>} : vector<8x128xf32>, vector<128x128xf32>, vector<8x128xf32> -> vector<8x128xf32>
    %142 = arith.addf %140, %141 : vector<8x128xf32>
    %143 = math.tanh %142 : vector<8x128xf32>
    %c7_i32_94 = arith.constant 7 : i32
    %144 = arith.index_cast %c7_i32_94 : i32 to index
    %c0_95 = arith.constant 0 : index
    %c0_96 = arith.constant 0 : index
    %145 = vector.load %arg11[%144, %c0_95, %c0_96] : memref<8x8x128xf32, #tpu.memory_space<vmem>>, vector<1x8x128xf32>
    %146 = vector.shape_cast %145 : vector<1x8x128xf32> to vector<8x128xf32>
    %cst_97 = arith.constant dense<0.000000e+00> : vector<8x128xf32>
    %147 = tpu.matmul %143, %92, %cst_97 {dimension_numbers = #tpu.dot_dimension_numbers<[1], [0], [0], [1], [0, 0, 1, 1], [], []>} : vector<8x128xf32>, vector<128x128xf32>, vector<8x128xf32> -> vector<8x128xf32>
    %148 = arith.addf %146, %147 : vector<8x128xf32>
    %149 = math.tanh %148 : vector<8x128xf32>
    %c8_i32_98 = arith.constant 8 : i32
    %c0_99 = arith.constant 0 : index
    %c0_100 = arith.constant 0 : index
    %150 = vector.load %arg8[%c0_99, %c0_100] : memref<128x128xf32, #tpu.memory_space<vmem>>, vector<128x128xf32>
    %c0_101 = arith.constant 0 : index
    %c0_102 = arith.constant 0 : index
    %151 = vector.load %arg9[%c0_101, %c0_102] : memref<1x128xf32, #tpu.memory_space<vmem>>, vector<1x128xf32>
    %cst_103 = arith.constant dense<0.000000e+00> : vector<8x128xf32>
    %152 = tpu.matmul %149, %150, %cst_103 {dimension_numbers = #tpu.dot_dimension_numbers<[1], [0], [0], [1], [0, 0, 1, 1], [], []>} : vector<8x128xf32>, vector<128x128xf32>, vector<8x128xf32> -> vector<8x128xf32>
    %153 = vector.broadcast %151 : vector<1x128xf32> to vector<8x128xf32>
    %154 = arith.addf %152, %153 : vector<8x128xf32>
    %155 = arith.negf %154 : vector<8x128xf32>
    %156 = math.exp %155 : vector<8x128xf32>
    %cst_104 = arith.constant 1.000000e+00 : f32
    %157 = vector.broadcast %cst_104 : f32 to vector<8x128xf32>
    %158 = arith.addf %157, %156 : vector<8x128xf32>
    %159 = arith.divf %157, %158 : vector<8x128xf32>
    %c0_105 = arith.constant 0 : index
    %c0_106 = arith.constant 0 : index
    %160 = vector.load %arg10[%c0_105, %c0_106] : memref<8x128xf32, #tpu.memory_space<vmem>>, vector<8x128xf32>
    tpu.vector_store %arg10[%c0_105, %c0_106], %159 {strides = array<i32>} : memref<8x128xf32, #tpu.memory_space<vmem>>, vector<8x128xf32>,
    return
  }
  func.func @transform_0(%arg0: i32) -> (i32, i32, i32) {
    %c0_i32 = arith.constant 0 : i32
    %c0_i32_0 = arith.constant 0 : i32
    %c0_i32_1 = arith.constant 0 : i32
    return %c0_i32, %arg0, %c0_i32_0 : i32, i32, i32
  }
  func.func @transform_1(%arg0: i32) -> (i32, i32) {
    %c0_i32 = arith.constant 0 : i32
    %c0_i32_0 = arith.constant 0 : i32
    %c0_i32_1 = arith.constant 0 : i32
    return %c0_i32, %c0_i32_0 : i32, i32
  }
  func.func @transform_2(%arg0: i32) -> (i32, i32) {
    %c0_i32 = arith.constant 0 : i32
    %c0_i32_0 = arith.constant 0 : i32
    %c0_i32_1 = arith.constant 0 : i32
    return %c0_i32, %c0_i32_0 : i32, i32
  }
  func.func @transform_3(%arg0: i32) -> (i32, i32) {
    %c0_i32 = arith.constant 0 : i32
    %c0_i32_0 = arith.constant 0 : i32
    %c0_i32_1 = arith.constant 0 : i32
    return %c0_i32, %c0_i32_0 : i32, i32
  }
  func.func @transform_4(%arg0: i32) -> (i32, i32) {
    %c0_i32 = arith.constant 0 : i32
    %c0_i32_0 = arith.constant 0 : i32
    %c0_i32_1 = arith.constant 0 : i32
    return %c0_i32, %c0_i32_0 : i32, i32
  }
  func.func @transform_5(%arg0: i32) -> (i32, i32) {
    %c0_i32 = arith.constant 0 : i32
    %c0_i32_0 = arith.constant 0 : i32
    %c0_i32_1 = arith.constant 0 : i32
    return %c0_i32, %c0_i32_0 : i32, i32
  }
  func.func @transform_6(%arg0: i32) -> (i32, i32) {
    %c0_i32 = arith.constant 0 : i32
    %c0_i32_0 = arith.constant 0 : i32
    %c0_i32_1 = arith.constant 0 : i32
    return %c0_i32, %c0_i32_0 : i32, i32
  }
  func.func @transform_7(%arg0: i32) -> (i32, i32) {
    %c0_i32 = arith.constant 0 : i32
    %c0_i32_0 = arith.constant 0 : i32
    %c0_i32_1 = arith.constant 0 : i32
    return %c0_i32, %c0_i32_0 : i32, i32
  }
  func.func @transform_8(%arg0: i32) -> (i32, i32) {
    %c0_i32 = arith.constant 0 : i32
    %c0_i32_0 = arith.constant 0 : i32
    %c0_i32_1 = arith.constant 0 : i32
    return %c0_i32, %c0_i32_0 : i32, i32
  }
  func.func @transform_9(%arg0: i32) -> (i32, i32) {
    %c0_i32 = arith.constant 0 : i32
    %c0_i32_0 = arith.constant 0 : i32
    return %arg0, %c0_i32 : i32, i32
  }
}

</mosaic_0001>

<bundles_post_ra>
// kernel: tpu_custom_call.1
= control target key start
LH: loop header
LB: loop body
LE: loop exit
PB: predicated region body
PF: predicated region fallthrough
CT: control target
= control target key end

     0   :  { %14 = vsyncpa [#allocation4], 0  ;;  %s4012_s0 = inlined_call_operand.hbm [shape: f32[8,8,32], index: 0, kind: input, shape index: {}]   ;;  %s4013_s1 = inlined_call_operand.hbm [shape: f32[32,128], index: 1, kind: input, shape index: {}]   ;;  %s4014_s2 = inlined_call_operand.hbm [shape: f32[128,128], index: 2, kind: input, shape index: {}]   ;;  %s4015_s3 = inlined_call_operand.vmem [shape: f32[1,128], index: 3, kind: input, shape index: {}]   ;;  %s4016_s4 = inlined_call_operand.hbm [shape: f32[128,128], index: 4, kind: input, shape index: {}]   ;;  %s4017_s5 = inlined_call_operand.hbm [shape: f32[128,128], index: 5, kind: input, shape index: {}]   ;;  %s4018_s6 = inlined_call_operand.vmem [shape: f32[1,128], index: 6, kind: input, shape index: {}]   ;;  %s4019_s7 = inlined_call_operand.hbm [shape: f32[128,128], index: 7, kind: input, shape index: {}]   ;;  %s4020_s8 = inlined_call_operand.vmem [shape: f32[1,128], index: 8, kind: input, shape index: {}]   ;;  %s4021_s9 = inlined_call_operand.hbm [shape: f32[8,128], index: 9, kind: output, shape index: {}]  }
   0x1   :  { %15 = vsyncpa [#allocation7], 0 }
   0x2   :  { %16 = vsyncpa [#allocation10], 0 }
   0x3   :  { %17 = vsyncpa [#allocation13], 0 }
   0x4   :  { %18 = vsyncpa [#allocation5], 0  ;;  %s3405_s30 = smov [#allocation6]   ;;  %s3406_s11 = smov [#allocation9]  }
   0x5   :  { %s36_s10 = sshll.u32 %s3405_s30, 4  ;;  %s62_s12 = sshll.u32 %s3406_s11, 4  ;;  %s37_s10 = int_to_ptr.vmem [resolvable:$true] %s36_s10  ;;  %s3467_s12 = int_to_ptr.vmem [resolvable:$true] %s62_s12 }
   0x6   :  { %s3241_s15 = scalar_lea.hbm %s4013_s1, 512 }
   0x7   :  { %p3242_p0 = scmp.ne.s32.totalorder %s4013_s1, %s3241_s15  ;;  %p3245_p1 = scmp.lt.u32.totalorder %s3241_s15, %s4013_s1 }
   0x9   :  { %p3247_p2 = pnand %p3245_p1, %p3242_p0 }
   0xb   :  { %3250 = shalt.err (!%p3247_p2)
}
   0xc   :  { %s3251_s20 = scalar_lea.vmem %s37_s10, 512  ;;  %p3256_p4 = scmp.lt.s32.totalorder %s37_s10, %s37_s10 }
   0xd   :  { %p3252_p3 = scmp.ne.s32.totalorder %s37_s10, %s3251_s20  ;;  %p3257_p5 = scmp.lt.s32.totalorder %s3251_s20, %s3251_s20 }
   0xf   :  { %p3258_p6 = por %p3257_p5, %p3256_p4 }
  0x11   :  { %p3259_p7 = pnand %p3258_p6, %p3252_p3 }
  0x13   :  { %3262 = shalt.err (!%p3259_p7)
}
  0x14   :  { %s3407_s21 = smov 128   ;;  %s3408_s22 = smov 8  }
  0x15   :  { %42 = dma.hbm_to_vmem [thread:$0]  %s4013_s1, 512, %s37_s10, [#allocation7], %s3407_s21, %s3407_s21, %s3408_s22  }
  0x16   :  { %s3263_s27 = scalar_lea.hbm %s4016_s4, 2048 }
  0x17   :  { %p3264_p8 = scmp.ne.s32.totalorder %s4016_s4, %s3263_s27  ;;  %p3267_p9 = scmp.lt.u32.totalorder %s3263_s27, %s4016_s4 }
  0x19   :  { %p3269_p10 = pnand %p3267_p9, %p3264_p8 }
  0x1b   :  { %3272 = shalt.err (!%p3269_p10)
}
  0x1c   :  { %s3273_s13 = scalar_lea.vmem %s3467_s12, 2048  ;;  %p3278_p12 = scmp.lt.s32.totalorder %s3467_s12, %s3467_s12 }
  0x1d   :  { %p3274_p11 = scmp.ne.s32.totalorder %s3467_s12, %s3273_s13  ;;  %p3279_p13 = scmp.lt.s32.totalorder %s3273_s13, %s3273_s13 }
  0x1f   :  { %p3280_p0 = por %p3279_p13, %p3278_p12 }
  0x21   :  { %p3281_p1 = pnand %p3280_p0, %p3274_p11 }
  0x23   :  { %3284 = shalt.err (!%p3281_p1)
}
  0x24   :  { %68 = dma.hbm_to_vmem [thread:$0]  %s4016_s4, 2048, %s3467_s12, [#allocation10], %s3407_s21, %s3407_s21, %s3408_s22  }
  0x25   :  { %s3409_s14 = smov [#allocation3]   ;;  %s3410_s16 = smov [#allocation8]  }
  0x26   :  { %s24_s15 = sshll.u32 %s3409_s14, 4  ;;  %s48_s17 = sshll.u32 %s3410_s16, 4  ;;  %s25_s15 = int_to_ptr.vmem [resolvable:$true] %s24_s15  ;;  %s3504_s17 = int_to_ptr.vmem [resolvable:$true] %s48_s17 }
  0x27   :  { %s3285_s20 = scalar_lea.hbm %s4012_s0, 1024 }
  0x28   :  { %p3286_p2 = scmp.ne.s32.totalorder %s4012_s0, %s3285_s20  ;;  %p3289_p3 = scmp.lt.u32.totalorder %s3285_s20, %s4012_s0 }
  0x2a   :  { %p3291_p4 = pnand %p3289_p3, %p3286_p2 }
  0x2c   :  { %3294 = shalt.err (!%p3291_p4)
}
  0x2d   :  { %s3295_s4 = scalar_lea.vmem %s25_s15, 1024  ;;  %p3300_p6 = scmp.lt.s32.totalorder %s25_s15, %s25_s15 }
  0x2e   :  { %p3296_p5 = scmp.ne.s32.totalorder %s25_s15, %s3295_s4  ;;  %p3301_p7 = scmp.lt.s32.totalorder %s3295_s4, %s3295_s4 }
  0x30   :  { %p3302_p8 = por %p3301_p7, %p3300_p6 }
  0x32   :  { %p3303_p9 = pnand %p3302_p8, %p3296_p5 }
  0x34   :  { %3306 = shalt.err (!%p3303_p9)
}
  0x35   :  { %30 = dma.hbm_to_vmem [thread:$0]  %s4012_s0, 1024, %s25_s15, [#allocation4], %s3407_s21, %s3407_s21, %s3408_s22  }
  0x36   :  { %s3307_s30 = scalar_lea.hbm %s4014_s2, 2048 }
  0x37   :  { %p3308_p10 = scmp.ne.s32.totalorder %s4014_s2, %s3307_s30  ;;  %p3311_p11 = scmp.lt.u32.totalorder %s3307_s30, %s4014_s2 }
  0x39   :  { %p3313_p12 = pnand %p3311_p11, %p3308_p10 }
  0x3b   :  { %3316 = shalt.err (!%p3313_p12)
}
  0x3c   :  { %s3317_s14 = scalar_lea.vmem %s3504_s17, 2048  ;;  %p3322_p0 = scmp.lt.s32.totalorder %s3504_s17, %s3504_s17 }
  0x3d   :  { %p3318_p13 = scmp.ne.s32.totalorder %s3504_s17, %s3317_s14  ;;  %p3323_p1 = scmp.lt.s32.totalorder %s3317_s14, %s3317_s14 }
  0x3f   :  { %p3324_p2 = por %p3323_p1, %p3322_p0 }
  0x41   :  { %p3325_p3 = pnand %p3324_p2, %p3318_p13 }
  0x43   :  { %3328 = shalt.err (!%p3325_p3)
}
  0x44   :  { %54 = dma.hbm_to_vmem [thread:$0]  %s4014_s2, 2048, %s3504_s17, [#allocation7], %s3407_s21, %s3407_s21, %s3408_s22  }
  0x45   :  { %s3411_s16 = smov [#allocation11]   ;;  %s3412_s19 = smov [#allocation12]  }
  0x46   :  { %s74_s18 = sshll.u32 %s3411_s16, 4  ;;  %s88_s20 = sshll.u32 %s3412_s19, 4  ;;  %s75_s18 = int_to_ptr.vmem [resolvable:$true] %s74_s18  ;;  %s3541_s20 = int_to_ptr.vmem [resolvable:$true] %s88_s20 }
  0x47   :  { %s3329_s25 = scalar_lea.hbm %s4017_s5, 2048 }
  0x48   :  { %p3330_p4 = scmp.ne.s32.totalorder %s4017_s5, %s3329_s25  ;;  %p3333_p5 = scmp.lt.u32.totalorder %s3329_s25, %s4017_s5 }
  0x4a   :  { %p3335_p6 = pnand %p3333_p5, %p3330_p4 }
  0x4c   :  { %3338 = shalt.err (!%p3335_p6)
}
  0x4d   :  { %s3339_s2 = scalar_lea.vmem %s75_s18, 2048  ;;  %p3344_p8 = scmp.lt.s32.totalorder %s75_s18, %s75_s18 }
  0x4e   :  { %p3340_p7 = scmp.ne.s32.totalorder %s75_s18, %s3339_s2  ;;  %p3345_p9 = scmp.lt.s32.totalorder %s3339_s2, %s3339_s2 }
  0x50   :  { %p3346_p10 = por %p3345_p9, %p3344_p8 }
  0x52   :  { %p3347_p11 = pnand %p3346_p10, %p3340_p7 }
  0x54   :  { %3350 = shalt.err (!%p3347_p11)
}
  0x55   :  { %80 = dma.hbm_to_vmem [thread:$0]  %s4017_s5, 2048, %s75_s18, [#allocation10], %s3407_s21, %s3407_s21, %s3408_s22  }
  0x56   :  { %s3351_s11 = scalar_lea.hbm %s4019_s7, 2048 }
  0x57   :  { %p3352_p12 = scmp.ne.s32.totalorder %s4019_s7, %s3351_s11  ;;  %p3355_p13 = scmp.lt.u32.totalorder %s3351_s11, %s4019_s7 }
  0x59   :  { %p3357_p0 = pnand %p3355_p13, %p3352_p12 }
  0x5b   :  { %3360 = shalt.err (!%p3357_p0)
}
  0x5c   :  { %s3361_s0 = scalar_lea.vmem %s3541_s20, 2048  ;;  %p3366_p2 = scmp.lt.s32.totalorder %s3541_s20, %s3541_s20 }
  0x5d   :  { %p3362_p1 = scmp.ne.s32.totalorder %s3541_s20, %s3361_s0  ;;  %p3367_p3 = scmp.lt.s32.totalorder %s3361_s0, %s3361_s0 }
  0x5f   :  { %p3368_p4 = por %p3367_p3, %p3366_p2 }
  0x61   :  { %p3369_p5 = pnand %p3368_p4, %p3362_p1 }
  0x63   :  { %3372 = shalt.err (!%p3369_p5)
}
  0x64   :  { %94 = dma.hbm_to_vmem [thread:$0]  %s4019_s7, 2048, %s3541_s20, [#allocation13], %s3407_s21, %s3407_s21, %s3408_s22  }
  0x65   :  { %3395 = dma.done.wait [#allocation4], 1024  }
  0x66   :  { %3396 = vsyncadd [#allocation4], 4294966272 }
  0x67   :  { %3397 = dma.done.wait [#allocation7], 2560  }
  0x68   :  { %3398 = vsyncadd [#allocation7], 4294964736 }
  0x69   :  { %3399 = dma.done.wait [#allocation10], 4096  }
  0x6a   :  { %3400 = vsyncadd [#allocation10], 4294963200 }
  0x6b   :  { %3401 = dma.done.wait [#allocation13], 2048  }
  0x6c   :  { %3402 = vsyncadd [#allocation13], 4294965248  ;;  %v3413_v0 = vmov 0.0|0.0   ;;  %vm3414_vm0 = vmmov 0   ;;  %v3415_v1 = vmov 0.0   ;;  %v119_v2 = vld [vmem:[#allocation8] sm:$0xff] }
  0x6d   :  { %2753 = vmatprep.subr.bf16.mxu1 %v3413_v0  ;;  %2138 = vmatprep.mubr.msk.f32.mxu1 %vm3414_vm0, %v3415_v1  ;;  %v120_v3 = vld [vmem:[#allocation8 + $0x8] sm:$0xff]  ;;  %v121_v4 = vld [vmem:[#allocation8 + $0x10] sm:$0xff]  ;;  %v122_v6 = vld [vmem:[#allocation8 + $0x18] sm:$0xff]  ;;  %vm150_vm1 = vcmask 261120   ;;  %s3416_s18 = smov [#allocation14]  }
  0x6e   :  { %v3581_v5 = vpack.c.bf16 %v120_v3, %v119_v2  ;;  %v3584_v7 = vpack.c.bf16 %v122_v6, %v121_v4  ;;  %v115_v8 = vld [vmem:[#allocation6] sm:$0xff]  ;;  %v116_v9 = vld [vmem:[#allocation6 + $0x8] sm:$0xff]  ;;  %v117_v13 = vld [vmem:[#allocation6 + $0x10] sm:$0xff]  ;;  %s1737_s19 = sshll.u32 %s3416_s18, 4  ;;  %s1738_s19 = int_to_ptr.vmem [resolvable:$true] %s1737_s19 }
  0x6f   :  { %v123_v10 = vld [vmem:[#allocation8 + $0x20] sm:$0xff]  ;;  %v124_v11 = vld [vmem:[#allocation8 + $0x28] sm:$0xff]  ;;  %v2745_v12 = vpack.c.bf16 %v116_v9, %v115_v8  ;;  %v118_v14 = vld [vmem:[#allocation6 + $0x18] sm:$0xff]  ;;  %s3373_s20 = scalar_lea.vmem %s1738_s19, 128  ;;  %p3378_p7 = scmp.lt.s32.totalorder %s1738_s19, %s1738_s19 }
  0x70   :  { %2755 = vmatpush3.bf16.msra.mxu1 %v3581_v5  ;;  %v2749_v15 = vpack.c.bf16 %v118_v14, %v117_v13  ;;  %v136_v16 = vld [vmem:[#allocation3] sm:$0xff]  ;;  %v3588_v17 = vpack.c.bf16 %v124_v11, %v123_v10  ;;  %v125_v18 = vld [vmem:[#allocation8 + $0x30] sm:$0xff]  ;;  %v126_v19 = vld [vmem:[#allocation8 + $0x38] sm:$0xff]  ;;  %p3374_p6 = scmp.ne.s32.totalorder %s1738_s19, %s3373_s20  ;;  %p3379_p8 = scmp.lt.s32.totalorder %s3373_s20, %s3373_s20 }
  0x71   :  { %2756 = vmatprep.subr.bf16.mxu1 %v3413_v0  ;;  %2746 = vmatprep.subr.bf16.mxu0 %v2745_v12  ;;  %v3593_v20 = vpack.c.bf16 %v126_v19, %v125_v18  ;;  %v137_v21 = vld [vmem:[#allocation3 + $0x8] sm:$0xff]  ;;  %v127_v22 = vld [vmem:[#allocation8 + $0x40] sm:$0xff]  ;;  %v129_v25 = vld [vmem:[#allocation8 + $0x50] sm:$0xff] }
  0x72   :  { %2748 = vmatpush3.bf16.msra.mxu0 %v2745_v12  ;;  %2094 = vmatprep.mubr.msk.f32.mxu0 %vm150_vm1, %v136_v16  ;;  %v128_v23 = vld [vmem:[#allocation8 + $0x48] sm:$0xff]  ;;  %v130_v26 = vld [vmem:[#allocation8 + $0x58] sm:$0xff]  ;;  %v131_v28 = vld [vmem:[#allocation8 + $0x60] sm:$0xff]  ;;  %p3380_p9 = por %p3379_p8, %p3378_p7 }
  0x73   :  { %2750 = vmatprep.subr.bf16.mxu0 %v2749_v15  ;;  %v3599_v24 = vpack.c.bf16 %v128_v23, %v127_v22  ;;  %v3605_v27 = vpack.c.bf16 %v130_v26, %v129_v25  ;;  %v132_v29 = vld [vmem:[#allocation8 + $0x68] sm:$0xff]  ;;  %v133_v31 = vld [vmem:[#allocation8 + $0x70] sm:$0xff]  ;;  %v134_v32 = vld [vmem:[#allocation8 + $0x78] sm:$0xff] }
  0x74   :  { %2758 = vmatpush3.bf16.msra.mxu1 %v3584_v7  ;;  %v3611_v30 = vpack.c.bf16 %v132_v29, %v131_v28  ;;  %v3617_v33 = vpack.c.bf16 %v134_v32, %v133_v31  ;;  %v138_v34 = vld [vmem:[#allocation3 + $0x10] sm:$0xff]  ;;  %v139_v35 = vld [vmem:[#allocation3 + $0x18] sm:$0xff]  ;;  %v140_v36 = vld [vmem:[#allocation3 + $0x20] sm:$0xff]  ;;  %p3381_p10 = pnand %p3380_p9, %p3374_p6 }
  0x75   :  { %2759 = vmatprep.subr.bf16.mxu1 %v3413_v0  ;;  %v141_v37 = vld [vmem:[#allocation3 + $0x28] sm:$0xff]  ;;  %v142_v38 = vld [vmem:[#allocation3 + $0x30] sm:$0xff]  ;;  %v143_v39 = vld [vmem:[#allocation3 + $0x38] sm:$0xff] }
  0x76   :  { %2752 = vmatpush3.bf16.msra.mxu0 %v2749_v15  ;;  %v3662_v42 = vld [vmem:[%s4015_s3] ss:$0 sm:$0xff]  ;;  %v889_v19 = vld [vmem:[#allocation9 + $0x10] sm:$0xff] }
  0x77   :  { %2777 = vmatprep.subr.bf16.mxu0 %v3413_v0  ;;  %v891_v23 = vld [vmem:[#allocation9 + $0x20] sm:$0xff]  ;;  %v893_v26 = vld [vmem:[#allocation9 + $0x30] sm:$0xff] }
  0x78   :  { %2761 = vmatpush3.bf16.msra.mxu1 %v3588_v17  ;;  %v895_v29 = vld [vmem:[#allocation9 + $0x40] sm:$0xff]  ;;  %v897_v32 = vld [vmem:[#allocation9 + $0x50] sm:$0xff] }
  0x79   :  { %2762 = vmatprep.subr.bf16.mxu1 %v3413_v0  ;;  %2095 = vmatmul.mubr.msk.f32.vlgmr.msra.gmra.mrb[0].mxu0 %vm150_vm1, %v137_v21 }
  0x7a   :  { %2779 = vmatpush3.bf16.msra.mxu0 %v3581_v5  ;;  %2097 = vmatprep.mubr.msk.f32.mxu0 %vm150_vm1, %v138_v34 }
  0x7b   :  { %2780 = vmatprep.subr.bf16.mxu0 %v3413_v0 }
  0x7c   :  { %2764 = vmatpush3.bf16.msra.mxu1 %v3593_v20 }
  0x7d   :  { %2765 = vmatprep.subr.bf16.mxu1 %v3413_v0  ;;  %2098 = vmatmul.mubr.msk.f32.gmra.mrb[2].mxu0 %vm150_vm1, %v139_v35  ;;  %v899_v35 = vld [vmem:[#allocation9 + $0x60] sm:$0xff] }
  0x7e   :  { %2782 = vmatpush3.bf16.msra.mxu0 %v3584_v7  ;;  %2100 = vmatprep.mubr.msk.f32.mxu0 %vm150_vm1, %v140_v36  ;;  %v900_v36 = vld [vmem:[#allocation9 + $0x68] sm:$0xff] }
  0x7f   :  { %2783 = vmatprep.subr.bf16.mxu0 %v3413_v0 }
  0x80   :  { %2767 = vmatpush3.bf16.msra.mxu1 %v3599_v24 }
  0x81   :  { %2768 = vmatprep.subr.bf16.mxu1 %v3413_v0  ;;  %2101 = vmatmul.mubr.msk.f32.gmra.mrb[4].mxu0 %vm150_vm1, %v141_v37  ;;  %v2969_v37 = vpack.c.bf16 %v900_v36, %v899_v35 }
  0x82   :  { %2785 = vmatpush3.bf16.msra.mxu0 %v3588_v17  ;;  %2103 = vmatprep.mubr.msk.f32.mxu0 %vm150_vm1, %v142_v38  ;;  %v901_v38 = vld [vmem:[#allocation9 + $0x70] sm:$0xff] }
  0x83   :  { %2786 = vmatprep.subr.bf16.mxu0 %v3413_v0 }
  0x84   :  { %2770 = vmatpush3.bf16.msra.mxu1 %v3605_v27 }
  0x85   :  { %2771 = vmatprep.subr.bf16.mxu1 %v3413_v0  ;;  %2104 = vmatmul.mubr.msk.f32.gmra.mrb[6].mxu0 %vm150_vm1, %v143_v39  ;;  %v902_v39 = vld [vmem:[#allocation9 + $0x78] sm:$0xff] }
  0x86   :  { %2788 = vmatpush3.bf16.msra.mxu0 %v3593_v20  ;;  %2173 = vmatprep.mubr.msk.f32.mxu0 %vm3414_vm0, %v3415_v1 }
  0x87   :  { %2789 = vmatprep.subr.bf16.mxu0 %v3413_v0 }
  0x88   :  { %2773 = vmatpush3.bf16.msra.mxu1 %v3611_v30 }
  0x89   :  { %2774 = vmatprep.subr.bf16.mxu1 %v3413_v0 }
  0x8a   :  { %2791 = vmatpush3.bf16.msra.mxu0 %v3599_v24 }
  0x8b   :  { %2792 = vmatprep.subr.bf16.mxu0 %v3413_v0 }
  0x8c   :  { %2776 = vmatpush3.bf16.msra.mxu1 %v3617_v33 }
  0x8d   :  { %2801 = vmatprep.subr.bf16.mxu1 %v3413_v0 }
  0x8e   :  { %2794 = vmatpush3.bf16.msra.mxu0 %v3605_v27 }
  0x8f   :  { %2139 = vmatmul.mubr.f32.vlgmr.msra.gmra.mrb[0].mxu1 %v3415_v1  ;;  %2795 = vmatprep.subr.bf16.mxu0 %v3413_v0 }
  0x90   :  { %2803 = vmatpush3.bf16.msra.mxu1 %v3581_v5  ;;  %2208 = vmatprep.mubr.msk.f32.mxu1 %vm3414_vm0, %v3415_v1 }
  0x91   :  { %2804 = vmatprep.subr.bf16.mxu1 %v3413_v0 }
  0x92   :  { %2797 = vmatpush3.bf16.msra.mxu0 %v3611_v30 }
  0x93   :  { %2798 = vmatprep.subr.bf16.mxu0 %v3413_v0 }
  0x94   :  { %2806 = vmatpush3.bf16.msra.mxu1 %v3584_v7 }
  0x95   :  { %2807 = vmatprep.subr.bf16.mxu1 %v3413_v0 }
  0x96   :  { %2800 = vmatpush3.bf16.msra.mxu0 %v3617_v33 }
  0x97   :  { %2825 = vmatprep.subr.bf16.mxu0 %v3413_v0 }
  0x98   :  { %2809 = vmatpush3.bf16.msra.mxu1 %v3588_v17 }
  0x99   :  { %2810 = vmatprep.subr.bf16.mxu1 %v3413_v0 }
  0x9c   :  { %2812 = vmatpush3.bf16.msra.mxu1 %v3593_v20 }
  0x9d   :  { %2813 = vmatprep.subr.bf16.mxu1 %v3413_v0 }
  0xa0   :  { %2815 = vmatpush3.bf16.msra.mxu1 %v3599_v24 }
  0xa1   :  { %2816 = vmatprep.subr.bf16.mxu1 %v3413_v0 }
  0xa4   :  { %2818 = vmatpush3.bf16.msra.mxu1 %v3605_v27 }
  0xa5   :  { %2819 = vmatprep.subr.bf16.mxu1 %v3413_v0 }
  0xa8   :  { %2821 = vmatpush3.bf16.msra.mxu1 %v3611_v30 }
  0xa9   :  { %2822 = vmatprep.subr.bf16.mxu1 %v3413_v0 }
  0xac   :  { %2824 = vmatpush3.bf16.msra.mxu1 %v3617_v33 }
  0xad   :  { %2849 = vmatprep.subr.bf16.mxu1 %v3413_v0 }
 0x14c   :  { %v2096_v40 = vpop.f32.mrb[0].mxu0 }
 0x14d   :  { %v241_v41 = vpop.f32.mrb[1].mxu0  ;;  %v247_v54 = vadd.f32 %v2096_v40, %v3662_v42  ;;  %v2973_v40 = vpack.c.bf16 %v902_v39, %v901_v38 }
 0x14e   :  { %v242_v43 = vadd.f32 %v3662_v42, %v241_v41  ;;  %v903_v41 = vld [vmem:[#allocation11] sm:$0xff] }
 0x150   :  { %v2099_v48 = vpop.f32.mrb[2].mxu0 }
 0x151   :  { %v251_v49 = vpop.f32.mrb[3].mxu0  ;;  %v257_v2 = vadd.f32 %v2099_v48, %v3662_v42  ;;  %v907_v48 = vld [vmem:[#allocation11 + $0x20] sm:$0xff] }
 0x152   :  { %v252_v59 = vadd.f32 %v3662_v42, %v251_v49  ;;  %v908_v49 = vld [vmem:[#allocation11 + $0x28] sm:$0xff] }
 0x154   :  { %v3686_v50 = vpop.f32.mrb[4].mxu0 }
 0x155   :  { %v3688_v51 = vpop.f32.mrb[5].mxu0  ;;  %v267_v15 = vadd.f32 %v3686_v50, %v3662_v42  ;;  %v3798_v50 = vpack.c.bf16 %v908_v49, %v907_v48 }
 0x156   :  { %v262_v9 = vadd.f32 %v3662_v42, %v3688_v51  ;;  %v909_v51 = vld [vmem:[#allocation11 + $0x30] sm:$0xff] }
 0x158   :  { %v3690_v52 = vpop.f32.mrb[6].mxu0 }
 0x159   :  { %v3692_v53 = vpop.f32.mrb[7].mxu0 }
 0x162   :  { %v355_v44 = vpop.f32.mrb[0].mxu1 }
 0x163   :  { %v359_v45 = vadd.f32 %v355_v44, %v242_v43  ;;  %v2140_v46 = vpop.f32.mrb[1].mxu1  ;;  %v904_v43 = vld [vmem:[#allocation11 + $0x8] sm:$0xff] }
 0x164   :  { %v3790_v44 = vpack.c.bf16 %v904_v43, %v903_v41  ;;  %v906_v46 = vld [vmem:[#allocation11 + $0x18] sm:$0xff] }
 0x165   :  { %3205 = vtanh.f32 %v359_v45  ;;  %v905_v45 = vld [vmem:[#allocation11 + $0x10] sm:$0xff] }
 0x16f   :  { %v3665_v47 = vpop.eup %3205 }
 0x170   :  { %2174 = vmatmul.mubr.f32.vlgmr.msra.gmra.mrb[8].mxu0 %v3665_v47 }
 0x171   :  { %2827 = vmatpush3.bf16.msra.mxu0 %v3581_v5  ;;  %2243 = vmatprep.mubr.msk.f32.mxu0 %vm3414_vm0, %v3415_v1 }
 0x172   :  { %2828 = vmatprep.subr.bf16.mxu0 %v3413_v0 }
 0x175   :  { %2830 = vmatpush3.bf16.msra.mxu0 %v3584_v7 }
 0x176   :  { %2831 = vmatprep.subr.bf16.mxu0 %v3413_v0 }
 0x179   :  { %2833 = vmatpush3.bf16.msra.mxu0 %v3588_v17 }
 0x17a   :  { %2834 = vmatprep.subr.bf16.mxu0 %v3413_v0 }
 0x17d   :  { %2836 = vmatpush3.bf16.msra.mxu0 %v3593_v20 }
 0x17e   :  { %2837 = vmatprep.subr.bf16.mxu0 %v3413_v0 }
 0x181   :  { %2839 = vmatpush3.bf16.msra.mxu0 %v3599_v24 }
 0x182   :  { %2840 = vmatprep.subr.bf16.mxu0 %v3413_v0 }
 0x185   :  { %2842 = vmatpush3.bf16.msra.mxu0 %v3605_v27 }
 0x186   :  { %2843 = vmatprep.subr.bf16.mxu0 %v3413_v0 }
 0x189   :  { %2845 = vmatpush3.bf16.msra.mxu0 %v3611_v30 }
 0x18a   :  { %2846 = vmatprep.subr.bf16.mxu0 %v3413_v0 }
 0x18d   :  { %2848 = vmatpush3.bf16.msra.mxu0 %v3617_v33 }
 0x18e   :  { %2873 = vmatprep.subr.bf16.mxu0 %v3413_v0 }
 0x243   :  { %v430_v55 = vpop.f32.mrb[8].mxu0 }
 0x244   :  { %v434_v56 = vadd.f32 %v430_v55, %v247_v54  ;;  %v2175_v57 = vpop.f32.mrb[9].mxu0  ;;  %v910_v54 = vld [vmem:[#allocation11 + $0x38] sm:$0xff] }
 0x245   :  { %v3802_v55 = vpack.c.bf16 %v910_v54, %v909_v51  ;;  %v912_v57 = vld [vmem:[#allocation11 + $0x48] sm:$0xff] }
 0x246   :  { %3207 = vtanh.f32 %v434_v56  ;;  %v911_v56 = vld [vmem:[#allocation11 + $0x40] sm:$0xff] }
 0x250   :  { %v3695_v58 = vpop.eup %3207 }
 0x251   :  { %2209 = vmatmul.mubr.f32.vlgmr.msra.gmra.mrb[2].mxu1 %v3695_v58 }
 0x252   :  { %2851 = vmatpush3.bf16.msra.mxu1 %v3581_v5  ;;  %2278 = vmatprep.mubr.msk.f32.mxu1 %vm3414_vm0, %v3415_v1 }
 0x253   :  { %2852 = vmatprep.subr.bf16.mxu1 %v3413_v0 }
 0x256   :  { %2854 = vmatpush3.bf16.msra.mxu1 %v3584_v7 }
 0x257   :  { %2855 = vmatprep.subr.bf16.mxu1 %v3413_v0 }
 0x25a   :  { %2857 = vmatpush3.bf16.msra.mxu1 %v3588_v17 }
 0x25b   :  { %2858 = vmatprep.subr.bf16.mxu1 %v3413_v0 }
 0x25e   :  { %2860 = vmatpush3.bf16.msra.mxu1 %v3593_v20 }
 0x25f   :  { %2861 = vmatprep.subr.bf16.mxu1 %v3413_v0 }
 0x262   :  { %2863 = vmatpush3.bf16.msra.mxu1 %v3599_v24 }
 0x263   :  { %2864 = vmatprep.subr.bf16.mxu1 %v3413_v0 }
 0x266   :  { %2866 = vmatpush3.bf16.msra.mxu1 %v3605_v27 }
 0x267   :  { %2867 = vmatprep.subr.bf16.mxu1 %v3413_v0 }
 0x26a   :  { %2869 = vmatpush3.bf16.msra.mxu1 %v3611_v30 }
 0x26b   :  { %2870 = vmatprep.subr.bf16.mxu1 %v3413_v0 }
 0x26e   :  { %2872 = vmatpush3.bf16.msra.mxu1 %v3617_v33 }
 0x26f   :  { %2897 = vmatprep.subr.bf16.mxu1 %v3413_v0 }
 0x324   :  { %v505_v60 = vpop.f32.mrb[2].mxu1 }
 0x325   :  { %v509_v61 = vadd.f32 %v505_v60, %v252_v59  ;;  %v2210_v62 = vpop.f32.mrb[3].mxu1  ;;  %v913_v59 = vld [vmem:[#allocation11 + $0x50] sm:$0xff]  ;;  %v914_v60 = vld [vmem:[#allocation11 + $0x58] sm:$0xff] }
 0x326   :  { %v915_v62 = vld [vmem:[#allocation11 + $0x60] sm:$0xff] }
 0x327   :  { %3209 = vtanh.f32 %v509_v61  ;;  %v3810_v61 = vpack.c.bf16 %v914_v60, %v913_v59  ;;  %v1634_v59 = vld [vmem:[#allocation12 + $0x18] sm:$0xff] }
 0x331   :  { %v3717_v63 = vpop.eup %3209 }
 0x332   :  { %2244 = vmatmul.mubr.f32.vlgmr.msra.gmra.mrb[10].mxu0 %v3717_v63 }
 0x333   :  { %2875 = vmatpush3.bf16.msra.mxu0 %v3581_v5  ;;  %2313 = vmatprep.mubr.msk.f32.mxu0 %vm3414_vm0, %v3415_v1 }
 0x334   :  { %2876 = vmatprep.subr.bf16.mxu0 %v3413_v0 }
 0x337   :  { %2878 = vmatpush3.bf16.msra.mxu0 %v3584_v7 }
 0x338   :  { %2879 = vmatprep.subr.bf16.mxu0 %v3413_v0 }
 0x33b   :  { %2881 = vmatpush3.bf16.msra.mxu0 %v3588_v17 }
 0x33c   :  { %2882 = vmatprep.subr.bf16.mxu0 %v3413_v0 }
 0x33f   :  { %2884 = vmatpush3.bf16.msra.mxu0 %v3593_v20 }
 0x340   :  { %2885 = vmatprep.subr.bf16.mxu0 %v3413_v0 }
 0x343   :  { %2887 = vmatpush3.bf16.msra.mxu0 %v3599_v24 }
 0x344   :  { %2888 = vmatprep.subr.bf16.mxu0 %v3413_v0 }
 0x347   :  { %2890 = vmatpush3.bf16.msra.mxu0 %v3605_v27 }
 0x348   :  { %2891 = vmatprep.subr.bf16.mxu0 %v3413_v0 }
 0x34b   :  { %2893 = vmatpush3.bf16.msra.mxu0 %v3611_v30 }
 0x34c   :  { %2894 = vmatprep.subr.bf16.mxu0 %v3413_v0 }
 0x34f   :  { %2896 = vmatpush3.bf16.msra.mxu0 %v3617_v33 }
 0x350   :  { %2921 = vmatprep.subr.bf16.mxu0 %v3413_v0 }
 0x405   :  { %v580_v3 = vpop.f32.mrb[10].mxu0 }
 0x406   :  { %v584_v4 = vadd.f32 %v580_v3, %v257_v2  ;;  %v2245_v6 = vpop.f32.mrb[11].mxu0  ;;  %v917_v3 = vld [vmem:[#allocation11 + $0x70] sm:$0xff] }
 0x408   :  { %3211 = vtanh.f32 %v584_v4  ;;  %v918_v4 = vld [vmem:[#allocation11 + $0x78] sm:$0xff] }
 0x409   :  { %v3818_v6 = vpack.c.bf16 %v918_v4, %v917_v3  ;;  %v1638_v3 = vld [vmem:[#allocation12 + $0x38] sm:$0xff] }
 0x412   :  { %v3739_v8 = vpop.eup %3211 }
 0x413   :  { %2279 = vmatmul.mubr.f32.vlgmr.msra.gmra.mrb[4].mxu1 %v3739_v8 }
 0x414   :  { %2899 = vmatpush3.bf16.msra.mxu1 %v3581_v5  ;;  %2348 = vmatprep.mubr.msk.f32.mxu1 %vm3414_vm0, %v3415_v1 }
 0x415   :  { %2900 = vmatprep.subr.bf16.mxu1 %v3413_v0 }
 0x418   :  { %2902 = vmatpush3.bf16.msra.mxu1 %v3584_v7 }
 0x419   :  { %2903 = vmatprep.subr.bf16.mxu1 %v3413_v0 }
 0x41c   :  { %2905 = vmatpush3.bf16.msra.mxu1 %v3588_v17 }
 0x41d   :  { %2906 = vmatprep.subr.bf16.mxu1 %v3413_v0 }
 0x420   :  { %2908 = vmatpush3.bf16.msra.mxu1 %v3593_v20 }
 0x421   :  { %2909 = vmatprep.subr.bf16.mxu1 %v3413_v0 }
 0x424   :  { %2911 = vmatpush3.bf16.msra.mxu1 %v3599_v24 }
 0x425   :  { %2912 = vmatprep.subr.bf16.mxu1 %v3413_v0 }
 0x428   :  { %2914 = vmatpush3.bf16.msra.mxu1 %v3605_v27 }
 0x429   :  { %2915 = vmatprep.subr.bf16.mxu1 %v3413_v0 }
 0x42c   :  { %2917 = vmatpush3.bf16.msra.mxu1 %v3611_v30 }
 0x42d   :  { %2918 = vmatprep.subr.bf16.mxu1 %v3413_v0 }
 0x430   :  { %2920 = vmatpush3.bf16.msra.mxu1 %v3617_v33 }
 0x4e6   :  { %v655_v10 = vpop.f32.mrb[4].mxu1 }
 0x4e7   :  { %v659_v11 = vadd.f32 %v655_v10, %v262_v9  ;;  %v2280_v12 = vpop.f32.mrb[5].mxu1 }
 0x4e9   :  { %3213 = vtanh.f32 %v659_v11 }
 0x4f3   :  { %v3761_v13 = vpop.eup %3213 }
 0x4f4   :  { %2314 = vmatmul.mubr.f32.vlgmr.msra.gmra.mrb[12].mxu0 %v3761_v13 }
 0x4f5   :  { %2923 = vmatpush3.bf16.msra.mxu0 %v3581_v5  ;;  %2383 = vmatprep.mubr.msk.f32.mxu0 %vm3414_vm0, %v3415_v1  ;;  %v887_v5 = vld [vmem:[#allocation9] sm:$0xff] }
 0x4f6   :  { %2924 = vmatprep.subr.bf16.mxu0 %v3413_v0 }
 0x4f9   :  { %2926 = vmatpush3.bf16.msra.mxu0 %v3584_v7  ;;  %v888_v7 = vld [vmem:[#allocation9 + $0x8] sm:$0xff] }
 0x4fa   :  { %2927 = vmatprep.subr.bf16.mxu0 %v3413_v0  ;;  %v2945_v14 = vpack.c.bf16 %v888_v7, %v887_v5 }
 0x4fc   :  { %2946 = vmatprep.subr.bf16.mxu1 %v2945_v14 }
 0x4fd   :  { %2929 = vmatpush3.bf16.msra.mxu0 %v3588_v17 }
 0x4fe   :  { %2930 = vmatprep.subr.bf16.mxu0 %v3413_v0 }
 0x501   :  { %2932 = vmatpush3.bf16.msra.mxu0 %v3593_v20  ;;  %v890_v20 = vld [vmem:[#allocation9 + $0x18] sm:$0xff] }
 0x502   :  { %2933 = vmatprep.subr.bf16.mxu0 %v3413_v0  ;;  %v2949_v21 = vpack.c.bf16 %v890_v20, %v889_v19 }
 0x505   :  { %2935 = vmatpush3.bf16.msra.mxu0 %v3599_v24  ;;  %v892_v24 = vld [vmem:[#allocation9 + $0x28] sm:$0xff] }
 0x506   :  { %2936 = vmatprep.subr.bf16.mxu0 %v3413_v0  ;;  %v2953_v25 = vpack.c.bf16 %v892_v24, %v891_v23 }
 0x509   :  { %2938 = vmatpush3.bf16.msra.mxu0 %v3605_v27  ;;  %v894_v27 = vld [vmem:[#allocation9 + $0x38] sm:$0xff] }
 0x50a   :  { %2939 = vmatprep.subr.bf16.mxu0 %v3413_v0  ;;  %v2957_v28 = vpack.c.bf16 %v894_v27, %v893_v26 }
 0x50d   :  { %2941 = vmatpush3.bf16.msra.mxu0 %v3611_v30  ;;  %v896_v30 = vld [vmem:[#allocation9 + $0x48] sm:$0xff] }
 0x50e   :  { %2942 = vmatprep.subr.bf16.mxu0 %v3413_v0  ;;  %v2961_v31 = vpack.c.bf16 %v896_v30, %v895_v29 }
 0x511   :  { %2944 = vmatpush3.bf16.msra.mxu0 %v3617_v33  ;;  %v898_v33 = vld [vmem:[#allocation9 + $0x58] sm:$0xff] }
 0x512   :  { %2977 = vmatprep.subr.bf16.mxu0 %v3413_v0  ;;  %v2965_v34 = vpack.c.bf16 %v898_v33, %v897_v32 }
 0x5c7   :  { %v730_v16 = vpop.f32.mrb[12].mxu0 }
 0x5c8   :  { %v734_v17 = vadd.f32 %v730_v16, %v267_v15  ;;  %v2315_v18 = vpop.f32.mrb[13].mxu0  ;;  %v277_v16 = vadd.f32 %v3690_v52, %v3662_v42 }
 0x5ca   :  { %3215 = vtanh.f32 %v734_v17 }
 0x5d4   :  { %v3216_v22 = vpop.eup %3215 }
 0x5d5   :  { %2349 = vmatmul.mubr.f32.vlgmr.msra.gmra.mrb[6].mxu1 %v3216_v22 }
 0x5d6   :  { %2948 = vmatpush3.bf16.msra.mxu1 %v2945_v14  ;;  %2418 = vmatprep.mubr.f32.mxu1 %v3665_v47  ;;  %v3794_v47 = vpack.c.bf16 %v906_v46, %v905_v45 }
 0x5d7   :  { %2950 = vmatprep.subr.bf16.mxu1 %v2949_v21 }
 0x5da   :  { %2952 = vmatpush3.bf16.msra.mxu1 %v2949_v21  ;;  %v3878_v21 = vld [vmem:[%s4018_s6] ss:$0 sm:$0xff] }
 0x5db   :  { %2954 = vmatprep.subr.bf16.mxu1 %v2953_v25 }
 0x5de   :  { %2956 = vmatpush3.bf16.msra.mxu1 %v2953_v25 }
 0x5df   :  { %2958 = vmatprep.subr.bf16.mxu1 %v2957_v28 }
 0x5e2   :  { %2960 = vmatpush3.bf16.msra.mxu1 %v2957_v28 }
 0x5e3   :  { %2962 = vmatprep.subr.bf16.mxu1 %v2961_v31 }
 0x5e6   :  { %2964 = vmatpush3.bf16.msra.mxu1 %v2961_v31 }
 0x5e7   :  { %2966 = vmatprep.subr.bf16.mxu1 %v2965_v34 }
 0x5ea   :  { %2968 = vmatpush3.bf16.msra.mxu1 %v2965_v34 }
 0x5eb   :  { %2970 = vmatprep.subr.bf16.mxu1 %v2969_v37 }
 0x5ee   :  { %2972 = vmatpush3.bf16.msra.mxu1 %v2969_v37 }
 0x5ef   :  { %2974 = vmatprep.subr.bf16.mxu1 %v2973_v40 }
 0x5f2   :  { %2976 = vmatpush3.bf16.msra.mxu1 %v2973_v40 }
 0x5f3   :  { %3001 = vmatprep.subr.bf16.mxu1 %v3413_v0 }
 0x5f5   :  { %2419 = vmatmul.mubr.f32.vlgmr.msra.gmra.mrb[8].mxu1 %v3695_v58  ;;  %v3806_v58 = vpack.c.bf16 %v912_v57, %v911_v56  ;;  %v1632_v56 = vld [vmem:[#allocation12 + $0x8] sm:$0xff]  ;;  %v1633_v57 = vld [vmem:[#allocation12 + $0x10] sm:$0xff] }
 0x5f6   :  { %2421 = vmatprep.mubr.f32.mxu1 %v3717_v63  ;;  %3003 = vmatpush3.bf16.msra.mxu1 %v3790_v44  ;;  %v916_v63 = vld [vmem:[#allocation11 + $0x68] sm:$0xff]  ;;  %v3173_v60 = vpack.c.bf16 %v1634_v59, %v1633_v57 }
 0x5f7   :  { %3004 = vmatprep.subr.bf16.mxu1 %v3413_v0  ;;  %v3814_v2 = vpack.c.bf16 %v916_v63, %v915_v62  ;;  %v1636_v62 = vld [vmem:[#allocation12 + $0x28] sm:$0xff] }
 0x5f9   :  { %2422 = vmatmul.mubr.f32.gmra.mrb[10].mxu1 %v3739_v8  ;;  %v272_v8 = vadd.f32 %v3662_v42, %v3692_v53 }
 0x5fa   :  { %2424 = vmatprep.mubr.f32.mxu1 %v3761_v13  ;;  %3006 = vmatpush3.bf16.msra.mxu1 %v3794_v47 }
 0x5fb   :  { %3007 = vmatprep.subr.bf16.mxu1 %v3413_v0 }
 0x5fd   :  { %2425 = vmatmul.mubr.f32.gmra.mrb[12].mxu1 %v3216_v22 }
 0x5fe   :  { %3009 = vmatpush3.bf16.msra.mxu1 %v3798_v50 }
 0x5ff   :  { %3010 = vmatprep.subr.bf16.mxu1 %v3413_v0 }
 0x602   :  { %3012 = vmatpush3.bf16.msra.mxu1 %v3802_v55 }
 0x603   :  { %3013 = vmatprep.subr.bf16.mxu1 %v3413_v0 }
 0x606   :  { %3015 = vmatpush3.bf16.msra.mxu1 %v3806_v58 }
 0x607   :  { %3016 = vmatprep.subr.bf16.mxu1 %v3413_v0 }
 0x60a   :  { %3018 = vmatpush3.bf16.msra.mxu1 %v3810_v61 }
 0x60b   :  { %3019 = vmatprep.subr.bf16.mxu1 %v3413_v0 }
 0x60e   :  { %3021 = vmatpush3.bf16.msra.mxu1 %v3814_v2 }
 0x60f   :  { %3022 = vmatprep.subr.bf16.mxu1 %v3413_v0 }
 0x612   :  { %3024 = vmatpush3.bf16.msra.mxu1 %v3818_v6 }
 0x613   :  { %3049 = vmatprep.subr.bf16.mxu1 %v3413_v0 }
 0x6a8   :  { %v805_v9 = vpop.f32.mrb[6].mxu1 }
 0x6a9   :  { %v809_v10 = vadd.f32 %v805_v9, %v272_v8  ;;  %v2350_v11 = vpop.f32.mrb[7].mxu1 }
 0x6ab   :  { %3217 = vtanh.f32 %v809_v10 }
 0x6b5   :  { %v3218_v12 = vpop.eup %3217 }
 0x6b6   :  { %2384 = vmatmul.mubr.f32.vlgmr.msra.gmra.mrb[14].mxu0 %v3218_v12  ;;  %2427 = vmatprep.mubr.f32.mxu1 %v3218_v12 }
 0x6b7   :  { %2979 = vmatpush3.bf16.msra.mxu0 %v3790_v44  ;;  %2462 = vmatprep.mubr.msk.f32.mxu0 %vm3414_vm0, %v3415_v1 }
 0x6b8   :  { %2980 = vmatprep.subr.bf16.mxu0 %v3413_v0 }
 0x6bb   :  { %2982 = vmatpush3.bf16.msra.mxu0 %v3794_v47 }
 0x6bc   :  { %2983 = vmatprep.subr.bf16.mxu0 %v3413_v0 }
 0x6bf   :  { %2985 = vmatpush3.bf16.msra.mxu0 %v3798_v50 }
 0x6c0   :  { %2986 = vmatprep.subr.bf16.mxu0 %v3413_v0 }
 0x6c3   :  { %2988 = vmatpush3.bf16.msra.mxu0 %v3802_v55 }
 0x6c4   :  { %2989 = vmatprep.subr.bf16.mxu0 %v3413_v0 }
 0x6c7   :  { %2991 = vmatpush3.bf16.msra.mxu0 %v3806_v58 }
 0x6c8   :  { %v3835_v53 = vpop.f32.mrb[8].mxu1  ;;  %2992 = vmatprep.subr.bf16.mxu0 %v3413_v0 }
 0x6c9   :  { %v1000_v13 = vpop.f32.mrb[9].mxu1  ;;  %v1006_v27 = vadd.f32 %v3835_v53, %v3878_v21 }
 0x6ca   :  { %v1001_v22 = vadd.f32 %v3878_v21, %v1000_v13  ;;  %v1641_v13 = vld [vmem:[#allocation12 + $0x50] sm:$0xff] }
 0x6cb   :  { %2994 = vmatpush3.bf16.msra.mxu0 %v3810_v61 }
 0x6cc   :  { %v3839_v5 = vpop.f32.mrb[10].mxu1  ;;  %2995 = vmatprep.subr.bf16.mxu0 %v3413_v0 }
 0x6cd   :  { %v3842_v7 = vpop.f32.mrb[11].mxu1  ;;  %v1016_v37 = vadd.f32 %v3839_v5, %v3878_v21  ;;  %v1642_v5 = vld [vmem:[#allocation12 + $0x58] sm:$0xff] }
 0x6ce   :  { %v1011_v32 = vadd.f32 %v3878_v21, %v3842_v7  ;;  %v3185_v7 = vpack.c.bf16 %v1642_v5, %v1641_v13 }
 0x6cf   :  { %2997 = vmatpush3.bf16.msra.mxu0 %v3814_v2 }
 0x6d0   :  { %v3845_v14 = vpop.f32.mrb[12].mxu1  ;;  %2998 = vmatprep.subr.bf16.mxu0 %v3413_v0 }
 0x6d1   :  { %v3848_v15 = vpop.f32.mrb[13].mxu1 }
 0x6d2   :  { %v1021_v43 = vadd.f32 %v3878_v21, %v3848_v15  ;;  %v1644_v15 = vld [vmem:[#allocation12 + $0x68] sm:$0xff] }
 0x6d3   :  { %3000 = vmatpush3.bf16.msra.mxu0 %v3818_v6 }
 0x6d4   :  { %3025 = vmatprep.subr.bf16.mxu0 %v3413_v0 }
 0x6d6   :  { %2463 = vmatmul.mubr.f32.vlgmr.msra.gmra.mrb[16].mxu0 %v3415_v1 }
 0x6d7   :  { %3027 = vmatpush3.bf16.msra.mxu0 %v3790_v44  ;;  %2532 = vmatprep.mubr.msk.f32.mxu0 %vm3414_vm0, %v3415_v1 }
 0x6d8   :  { %3028 = vmatprep.subr.bf16.mxu0 %v3413_v0 }
 0x6db   :  { %3030 = vmatpush3.bf16.msra.mxu0 %v3794_v47 }
 0x6dc   :  { %3031 = vmatprep.subr.bf16.mxu0 %v3413_v0 }
 0x6df   :  { %3033 = vmatpush3.bf16.msra.mxu0 %v3798_v50 }
 0x6e0   :  { %3034 = vmatprep.subr.bf16.mxu0 %v3413_v0 }
 0x6e3   :  { %3036 = vmatpush3.bf16.msra.mxu0 %v3802_v55 }
 0x6e4   :  { %3037 = vmatprep.subr.bf16.mxu0 %v3413_v0 }
 0x6e7   :  { %3039 = vmatpush3.bf16.msra.mxu0 %v3806_v58 }
 0x6e8   :  { %3040 = vmatprep.subr.bf16.mxu0 %v3413_v0 }
 0x6eb   :  { %3042 = vmatpush3.bf16.msra.mxu0 %v3810_v61 }
 0x6ec   :  { %3043 = vmatprep.subr.bf16.mxu0 %v3413_v0 }
 0x6ef   :  { %3045 = vmatpush3.bf16.msra.mxu0 %v3814_v2 }
 0x6f0   :  { %3046 = vmatprep.subr.bf16.mxu0 %v3413_v0 }
 0x6f3   :  { %3048 = vmatpush3.bf16.msra.mxu0 %v3818_v6 }
 0x6f4   :  { %3073 = vmatprep.subr.bf16.mxu0 %v3413_v0 }
 0x789   :  { %v880_v17 = vpop.f32.mrb[14].mxu0 }
 0x78a   :  { %v884_v18 = vadd.f32 %v880_v17, %v277_v16  ;;  %v2385_v19 = vpop.f32.mrb[15].mxu0  ;;  %v1645_v17 = vld [vmem:[#allocation12 + $0x70] sm:$0xff] }
 0x78c   :  { %3219 = vtanh.f32 %v884_v18  ;;  %v1646_v18 = vld [vmem:[#allocation12 + $0x78] sm:$0xff] }
 0x78d   :  { %v3191_v19 = vpack.c.bf16 %v1646_v18, %v1645_v17 }
 0x796   :  { %v3220_v20 = vpop.eup %3219 }
 0x797   :  { %2428 = vmatmul.mubr.f32.gmra.mrb[14].mxu1 %v3220_v20 }
 0x798   :  { %2497 = vmatprep.mubr.msk.f32.mxu1 %vm3414_vm0, %v3415_v1 }
 0x7a9   :  { %v1114_v23 = vpop.f32.mrb[16].mxu0 }
 0x7aa   :  { %v1118_v24 = vadd.f32 %v1114_v23, %v1001_v22  ;;  %v2464_v25 = vpop.f32.mrb[17].mxu0 }
 0x7ac   :  { %3221 = vtanh.f32 %v1118_v24 }
 0x7b6   :  { %v3222_v42 = vpop.eup %3221 }
 0x7b7   :  { %2498 = vmatmul.mubr.f32.vlgmr.msra.gmra.mrb[16].mxu1 %v3222_v42  ;;  %v1759_v42 = vld [vmem:[%s4020_s8] ss:$0 sm:$0xff] }
 0x7b8   :  { %3051 = vmatpush3.bf16.msra.mxu1 %v3790_v44  ;;  %2567 = vmatprep.mubr.msk.f32.mxu1 %vm3414_vm0, %v3415_v1 }
 0x7b9   :  { %3052 = vmatprep.subr.bf16.mxu1 %v3413_v0 }
 0x7bc   :  { %3054 = vmatpush3.bf16.msra.mxu1 %v3794_v47 }
 0x7bd   :  { %3055 = vmatprep.subr.bf16.mxu1 %v3413_v0 }
 0x7c0   :  { %3057 = vmatpush3.bf16.msra.mxu1 %v3798_v50 }
 0x7c1   :  { %3058 = vmatprep.subr.bf16.mxu1 %v3413_v0 }
 0x7c4   :  { %3060 = vmatpush3.bf16.msra.mxu1 %v3802_v55 }
 0x7c5   :  { %3061 = vmatprep.subr.bf16.mxu1 %v3413_v0 }
 0x7c8   :  { %3063 = vmatpush3.bf16.msra.mxu1 %v3806_v58 }
 0x7c9   :  { %3064 = vmatprep.subr.bf16.mxu1 %v3413_v0 }
 0x7cc   :  { %3066 = vmatpush3.bf16.msra.mxu1 %v3810_v61 }
 0x7cd   :  { %3067 = vmatprep.subr.bf16.mxu1 %v3413_v0 }
 0x7d0   :  { %3069 = vmatpush3.bf16.msra.mxu1 %v3814_v2 }
 0x7d1   :  { %3070 = vmatprep.subr.bf16.mxu1 %v3413_v0 }
 0x7d4   :  { %3072 = vmatpush3.bf16.msra.mxu1 %v3818_v6 }
 0x7d5   :  { %3097 = vmatprep.subr.bf16.mxu1 %v3413_v0 }
 0x86a   :  { %v3899_v52 = vpop.f32.mrb[14].mxu1 }
 0x86b   :  { %v3901_v26 = vpop.f32.mrb[15].mxu1  ;;  %v1036_v20 = vadd.f32 %v3899_v52, %v3878_v21 }
 0x86c   :  { %v1031_v9 = vadd.f32 %v3878_v21, %v3901_v26 }
 0x88a   :  { %v1187_v28 = vpop.f32.mrb[16].mxu1 }
 0x88b   :  { %v1191_v29 = vadd.f32 %v1187_v28, %v1006_v27  ;;  %v2499_v30 = vpop.f32.mrb[17].mxu1 }
 0x88d   :  { %3223 = vtanh.f32 %v1191_v29 }
 0x897   :  { %v3224_v31 = vpop.eup %3223 }
 0x898   :  { %2533 = vmatmul.mubr.f32.vlgmr.msra.gmra.mrb[18].mxu0 %v3224_v31 }
 0x899   :  { %3075 = vmatpush3.bf16.msra.mxu0 %v3790_v44  ;;  %2602 = vmatprep.mubr.msk.f32.mxu0 %vm3414_vm0, %v3415_v1 }
 0x89a   :  { %3076 = vmatprep.subr.bf16.mxu0 %v3413_v0 }
 0x89d   :  { %3078 = vmatpush3.bf16.msra.mxu0 %v3794_v47 }
 0x89e   :  { %3079 = vmatprep.subr.bf16.mxu0 %v3413_v0 }
 0x8a1   :  { %3081 = vmatpush3.bf16.msra.mxu0 %v3798_v50 }
 0x8a2   :  { %3082 = vmatprep.subr.bf16.mxu0 %v3413_v0 }
 0x8a5   :  { %3084 = vmatpush3.bf16.msra.mxu0 %v3802_v55 }
 0x8a6   :  { %3085 = vmatprep.subr.bf16.mxu0 %v3413_v0 }
 0x8a9   :  { %3087 = vmatpush3.bf16.msra.mxu0 %v3806_v58 }
 0x8aa   :  { %3088 = vmatprep.subr.bf16.mxu0 %v3413_v0 }
 0x8ad   :  { %3090 = vmatpush3.bf16.msra.mxu0 %v3810_v61 }
 0x8ae   :  { %3091 = vmatprep.subr.bf16.mxu0 %v3413_v0 }
 0x8b1   :  { %3093 = vmatpush3.bf16.msra.mxu0 %v3814_v2 }
 0x8b2   :  { %3094 = vmatprep.subr.bf16.mxu0 %v3413_v0 }
 0x8b5   :  { %3096 = vmatpush3.bf16.msra.mxu0 %v3818_v6 }
 0x8b6   :  { %3121 = vmatprep.subr.bf16.mxu0 %v3413_v0 }
 0x96b   :  { %v1260_v33 = vpop.f32.mrb[18].mxu0 }
 0x96c   :  { %v1264_v34 = vadd.f32 %v1260_v33, %v1011_v32  ;;  %v2534_v35 = vpop.f32.mrb[19].mxu0 }
 0x96e   :  { %3225 = vtanh.f32 %v1264_v34 }
 0x978   :  { %v3226_v36 = vpop.eup %3225 }
 0x979   :  { %2568 = vmatmul.mubr.f32.vlgmr.msra.gmra.mrb[18].mxu1 %v3226_v36 }
 0x97a   :  { %3099 = vmatpush3.bf16.msra.mxu1 %v3790_v44  ;;  %2637 = vmatprep.mubr.msk.f32.mxu1 %vm3414_vm0, %v3415_v1 }
 0x97b   :  { %3100 = vmatprep.subr.bf16.mxu1 %v3413_v0 }
 0x97e   :  { %3102 = vmatpush3.bf16.msra.mxu1 %v3794_v47 }
 0x97f   :  { %3103 = vmatprep.subr.bf16.mxu1 %v3413_v0 }
 0x982   :  { %3105 = vmatpush3.bf16.msra.mxu1 %v3798_v50 }
 0x983   :  { %3106 = vmatprep.subr.bf16.mxu1 %v3413_v0 }
 0x986   :  { %3108 = vmatpush3.bf16.msra.mxu1 %v3802_v55 }
 0x987   :  { %3109 = vmatprep.subr.bf16.mxu1 %v3413_v0 }
 0x98a   :  { %3111 = vmatpush3.bf16.msra.mxu1 %v3806_v58 }
 0x98b   :  { %3112 = vmatprep.subr.bf16.mxu1 %v3413_v0 }
 0x98e   :  { %3114 = vmatpush3.bf16.msra.mxu1 %v3810_v61 }
 0x98f   :  { %3115 = vmatprep.subr.bf16.mxu1 %v3413_v0 }
 0x992   :  { %3117 = vmatpush3.bf16.msra.mxu1 %v3814_v2 }
 0x993   :  { %3118 = vmatprep.subr.bf16.mxu1 %v3413_v0 }
 0x996   :  { %3120 = vmatpush3.bf16.msra.mxu1 %v3818_v6 }
 0x997   :  { %3145 = vmatprep.subr.bf16.mxu1 %v3413_v0 }
 0xa4c   :  { %v1333_v38 = vpop.f32.mrb[18].mxu1 }
 0xa4d   :  { %v1337_v39 = vadd.f32 %v1333_v38, %v1016_v37  ;;  %v2569_v40 = vpop.f32.mrb[19].mxu1 }
 0xa4f   :  { %3227 = vtanh.f32 %v1337_v39 }
 0xa59   :  { %v3228_v41 = vpop.eup %3227 }
 0xa5a   :  { %2603 = vmatmul.mubr.f32.vlgmr.msra.gmra.mrb[20].mxu0 %v3228_v41 }
 0xa5b   :  { %3123 = vmatpush3.bf16.msra.mxu0 %v3790_v44  ;;  %2672 = vmatprep.mubr.msk.f32.mxu0 %vm3414_vm0, %v3415_v1 }
 0xa5c   :  { %3124 = vmatprep.subr.bf16.mxu0 %v3413_v0 }
 0xa5f   :  { %3126 = vmatpush3.bf16.msra.mxu0 %v3794_v47 }
 0xa60   :  { %3127 = vmatprep.subr.bf16.mxu0 %v3413_v0 }
 0xa63   :  { %3129 = vmatpush3.bf16.msra.mxu0 %v3798_v50 }
 0xa64   :  { %3130 = vmatprep.subr.bf16.mxu0 %v3413_v0 }
 0xa67   :  { %3132 = vmatpush3.bf16.msra.mxu0 %v3802_v55 }
 0xa68   :  { %3133 = vmatprep.subr.bf16.mxu0 %v3413_v0 }
 0xa6b   :  { %3135 = vmatpush3.bf16.msra.mxu0 %v3806_v58 }
 0xa6c   :  { %3136 = vmatprep.subr.bf16.mxu0 %v3413_v0 }
 0xa6f   :  { %3138 = vmatpush3.bf16.msra.mxu0 %v3810_v61 }
 0xa70   :  { %3139 = vmatprep.subr.bf16.mxu0 %v3413_v0 }
 0xa73   :  { %3141 = vmatpush3.bf16.msra.mxu0 %v3814_v2 }
 0xa74   :  { %3142 = vmatprep.subr.bf16.mxu0 %v3413_v0 }
 0xa77   :  { %3144 = vmatpush3.bf16.msra.mxu0 %v3818_v6 }
 0xa78   :  { %3169 = vmatprep.subr.bf16.mxu0 %v3413_v0 }
 0xb2d   :  { %v1406_v45 = vpop.f32.mrb[20].mxu0 }
 0xb2e   :  { %v1410_v46 = vadd.f32 %v1406_v45, %v1021_v43  ;;  %v2604_v48 = vpop.f32.mrb[21].mxu0 }
 0xb30   :  { %3229 = vtanh.f32 %v1410_v46 }
 0xb3a   :  { %v3230_v49 = vpop.eup %3229 }
 0xb3b   :  { %2638 = vmatmul.mubr.f32.vlgmr.msra.gmra.mrb[20].mxu1 %v3230_v49 }
 0xb3c   :  { %3147 = vmatpush3.bf16.msra.mxu1 %v3790_v44  ;;  %2707 = vmatprep.mubr.msk.f32.mxu1 %vm3414_vm0, %v3415_v1  ;;  %v1026_v44 = vadd.f32 %v3845_v14, %v3878_v21  ;;  %v1643_v14 = vld [vmem:[#allocation12 + $0x60] sm:$0xff] }
 0xb3d   :  { %3148 = vmatprep.subr.bf16.mxu1 %v3413_v0  ;;  %v3188_v16 = vpack.c.bf16 %v1644_v15, %v1643_v14 }
 0xb40   :  { %3150 = vmatpush3.bf16.msra.mxu1 %v3794_v47 }
 0xb41   :  { %3151 = vmatprep.subr.bf16.mxu1 %v3413_v0 }
 0xb44   :  { %3153 = vmatpush3.bf16.msra.mxu1 %v3798_v50 }
 0xb45   :  { %3154 = vmatprep.subr.bf16.mxu1 %v3413_v0 }
 0xb48   :  { %3156 = vmatpush3.bf16.msra.mxu1 %v3802_v55  ;;  %v1631_v55 = vld [vmem:[#allocation12] sm:$0xff] }
 0xb49   :  { %3157 = vmatprep.subr.bf16.mxu1 %v3413_v0 }
 0xb4c   :  { %3159 = vmatpush3.bf16.msra.mxu1 %v3806_v58  ;;  %v3170_v58 = vpack.c.bf16 %v1632_v56, %v1631_v55 }
 0xb4d   :  { %3160 = vmatprep.subr.bf16.mxu1 %v3413_v0 }
 0xb50   :  { %3162 = vmatpush3.bf16.msra.mxu1 %v3810_v61  ;;  %v1635_v61 = vld [vmem:[#allocation12 + $0x20] sm:$0xff] }
 0xb51   :  { %3163 = vmatprep.subr.bf16.mxu1 %v3413_v0  ;;  %v3176_v63 = vpack.c.bf16 %v1636_v62, %v1635_v61 }
 0xb54   :  { %3165 = vmatpush3.bf16.msra.mxu1 %v3814_v2  ;;  %v1637_v2 = vld [vmem:[#allocation12 + $0x30] sm:$0xff] }
 0xb55   :  { %3166 = vmatprep.subr.bf16.mxu1 %v3413_v0  ;;  %v3179_v4 = vpack.c.bf16 %v1638_v3, %v1637_v2 }
 0xb58   :  { %3168 = vmatpush3.bf16.msra.mxu1 %v3818_v6  ;;  %v1640_v6 = vld [vmem:[#allocation12 + $0x48] sm:$0xff] }
 0xc0e   :  { %v1479_v47 = vpop.f32.mrb[20].mxu1 }
 0xc0f   :  { %v1483_v50 = vadd.f32 %v1479_v47, %v1026_v44  ;;  %v2639_v51 = vpop.f32.mrb[21].mxu1 }
 0xc11   :  { %3231 = vtanh.f32 %v1483_v50 }
 0xc1b   :  { %v3232_v54 = vpop.eup %3231 }
 0xc1c   :  { %2673 = vmatmul.mubr.f32.vlgmr.msra.gmra.mrb[22].mxu0 %v3232_v54 }
 0xc1d   :  { %2742 = vmatprep.mubr.msk.f32.mxu0 %vm3414_vm0, %v3415_v1  ;;  %3171 = vmatpush3.bf16.msra.mxu0 %v3170_v58  ;;  %v1639_v1 = vld [vmem:[#allocation12 + $0x40] sm:$0xff] }
 0xc1e   :  { %3172 = vmatprep.subr.bf16.mxu0 %v3413_v0  ;;  %v3182_v8 = vpack.c.bf16 %v1640_v6, %v1639_v1 }
 0xc21   :  { %3174 = vmatpush3.bf16.msra.mxu0 %v3173_v60 }
 0xc22   :  { %3175 = vmatprep.subr.bf16.mxu0 %v3413_v0 }
 0xc25   :  { %3177 = vmatpush3.bf16.msra.mxu0 %v3176_v63 }
 0xc26   :  { %3178 = vmatprep.subr.bf16.mxu0 %v3413_v0 }
 0xc29   :  { %3180 = vmatpush3.bf16.msra.mxu0 %v3179_v4 }
 0xc2a   :  { %3181 = vmatprep.subr.bf16.mxu0 %v3413_v0 }
 0xc2d   :  { %3183 = vmatpush3.bf16.msra.mxu0 %v3182_v8 }
 0xc2e   :  { %3184 = vmatprep.subr.bf16.mxu0 %v3413_v0 }
 0xc31   :  { %3186 = vmatpush3.bf16.msra.mxu0 %v3185_v7 }
 0xc32   :  { %3187 = vmatprep.subr.bf16.mxu0 %v3413_v0 }
 0xc35   :  { %3189 = vmatpush3.bf16.msra.mxu0 %v3188_v16 }
 0xc36   :  { %3190 = vmatprep.subr.bf16.mxu0 %v3413_v0 }
 0xc39   :  { %3192 = vmatpush3.bf16.msra.mxu0 %v3191_v19 }
 0xcef   :  { %v1552_v10 = vpop.f32.mrb[22].mxu0 }
 0xcf0   :  { %v1556_v11 = vadd.f32 %v1552_v10, %v1031_v9  ;;  %v2674_v12 = vpop.f32.mrb[23].mxu0 }
 0xcf2   :  { %3233 = vtanh.f32 %v1556_v11 }
 0xcfc   :  { %v3234_v53 = vpop.eup %3233 }
 0xcfd   :  { %2708 = vmatmul.mubr.f32.vlgmr.msra.gmra.mrb[22].mxu1 %v3234_v53 }
 0xdd0   :  { %v1625_v22 = vpop.f32.mrb[22].mxu1 }
 0xdd1   :  { %v1629_v23 = vadd.f32 %v1625_v22, %v1036_v20  ;;  %v2709_v24 = vpop.f32.mrb[23].mxu1 }
 0xdd3   :  { %3235 = vtanh.f32 %v1629_v23 }
 0xddd   :  { %v3236_v25 = vpop.eup %3235 }
 0xdde   :  { %2743 = vmatmul.mubr.f32.vlgmr.msra.gmra.mrb[24].mxu0 %v3236_v25 }
 0xeb1   :  { %v1720_v26 = vpop.f32.mrb[24].mxu0 }
 0xeb2   :  { %v1721_v27 = vadd.f32 %v1759_v42, %v1720_v26  ;;  %v2744_v28 = vpop.f32.mrb[25].mxu0 }
 0xeb4   :  { %v1760_v29 = vmul.f32 -1.442695, %v1721_v27 }
 0xeb6   :  { %3237 = vpow2.f32 %v1760_v29 }
 0xec0   :  { %v3238_v0 = vpop.eup %3237 }
 0xec1   :  { %v1727_v30 = vadd.f32 1.0, %v3238_v0 }
 0xec3   :  { %3239 = vrcp.f32 %v1727_v30 }
 0xecd   :  { %v3240_v21 = vpop.eup %3239 }
 0xece   :  { %1730 = vst [vmem:[#allocation14] sm:$0xff] %v3240_v21 }
 0xecf   :  { %3384 = shalt.err (!%p3381_p10)
}
 0xed0   :  { %s3385_s24 = scalar_lea.hbm %s4021_s9, 128 }
 0xed1   :  { %p3386_p11 = scmp.ne.s32.totalorder %s4021_s9, %s3385_s24  ;;  %p3389_p12 = scmp.lt.u32.totalorder %s3385_s24, %s4021_s9 }
 0xed3   :  { %p3391_p13 = pnand %p3389_p12, %p3386_p11 }
 0xed5   :  { %3394 = shalt.err (!%p3391_p13)
}
 0xed6   :  { %1740 = dma.vmem_to_hbm [thread:$0]  %s1738_s19, 128, %s4021_s9, [#allocation5]  }
 0xed7   :  { %3403 = dma.done.wait [#allocation5], 128  }
 0xed8   :  { %3404 = vsyncadd [#allocation5], 4294967168 }
 0xed9   :  { %1744 = vsyncpa [#allocation4], 1 }
 0xeda   :  { %1745 = vsyncpa [#allocation7], 1 }
 0xedb   :  { %1746 = vsyncpa [#allocation10], 1 }
 0xedc   :  { %1747 = vsyncpa [#allocation13], 1 }
 0xedd   :  { %1748 = vsyncpa [#allocation5], 1 }

</bundles_post_ra>
